<compile_context>
chip_gen: v7x
topology: tpu7x:2x2x1
jax: 0.10.0
libtpu: 0.0.40
codegen_flags: <defaults>
</compile_context>

<pallas_src>
import functools

import jax
import jax.numpy as jnp
from jax.experimental import pallas as pl
from jax.experimental.pallas import tpu as pltpu

_LANES = 128
_SUBLANES = 8
_MAX_ROW_TILE = 256


# ------------------------------- Pallas kernel ------------------------------ #

def _fused_mlp_kernel(*refs, acts):
    """Entire PPO forward for one row-tile: chained 2-D matmuls in VMEM.

    refs = (x_ref, w0_ref, b0_ref, w1_ref, b1_ref, ..., o_ref); len(acts) layers.
    Conv layers arrive pre-folded into dense NCHW-ordered matrices; every
    weight is zero-padded to 128-lane multiples, so each step is a lane-dense
    (rows, K) @ (K, N) bf16 matmul with f32 accumulation, f32 bias/activation.
    """
    x_ref, o_ref = refs[0], refs[-1]
    h = x_ref[...]                                            # f32 (rows, K0)
    for layer, act in enumerate(acts):
        w = refs[1 + 2 * layer][...]                          # bf16 (K, N)
        b = refs[2 + 2 * layer][...]                          # f32  (1, N)
        h = jnp.dot(h.astype(jnp.bfloat16), w,
                    preferred_element_type=jnp.float32) + b
        if act == "relu":
            h = jnp.maximum(h, 0.0)
        elif act == "tanh":
            h = jnp.tanh(h)
    o_ref[...] = h.astype(o_ref.dtype)


# ------------------------------ jitted forward ------------------------------ #

@functools.partial(jax.jit, static_argnames=("acts", "out_dim", "in_pad"))
def _ppo_forward_impl(weights, biases, x_nchw, *, acts, out_dim, in_pad):
    n = x_nchw.shape[0]
    # NCHW flatten only — the conv fold is built in NCHW order, so no transpose.
    x_flat = x_nchw.reshape(n, -1).astype(jnp.float32)

    row_tile = _MAX_ROW_TILE if n >= _MAX_ROW_TILE else ((n + _SUBLANES - 1)
                                                         // _SUBLANES) * _SUBLANES
    n_pad = ((n + row_tile - 1) // row_tile) * row_tile
    # Pad rows to the tile multiple and lanes to the padded K of layer 0.
    x_pad = jnp.zeros((n_pad, in_pad), jnp.float32).at[:n, : x_flat.shape[1]].set(x_flat)

    out_pad = biases[-1].shape[1]                 # lane-dense (128-padded) output width
    operands = [x_pad]
    in_specs = [pl.BlockSpec((row_tile, in_pad), lambda i: (i, 0))]
    for w, b in zip(weights, biases):
        operands += [w, b]
        in_specs += [pl.BlockSpec(w.shape, lambda i: (0, 0)),   # weights VMEM-resident
                     pl.BlockSpec(b.shape, lambda i: (0, 0))]

    kernel = functools.partial(_fused_mlp_kernel, acts=acts)
    slab = pl.pallas_call(
        kernel,
        out_shape=jax.ShapeDtypeStruct((n_pad, out_pad), jnp.float32),
        grid=(n_pad // row_tile,),
        in_specs=in_specs,
        out_specs=pl.BlockSpec((row_tile, out_pad), lambda i: (i, 0)),
        compiler_params=pltpu.CompilerParams(dimension_semantics=("parallel",)),
    )(*operands)

    out = slab[:n, :out_dim]
    return out[:, 0], out[:, 1:]                  # (value, policy logits)


def ppo_forward(params, x_nchw):
    return _ppo_forward_impl(params["weights"], params["biases"], x_nchw,
                             acts=params["acts"], out_dim=params["out_dim"],
                             in_pad=params["in_pad"])


# ------------------------------ param building ------------------------------ #

def _round_up(n, m):
    return ((n + m - 1) // m) * m


def _pad_to(arr2d, rows, cols):
    out = jnp.zeros((rows, cols), arr2d.dtype)
    return out.at[: arr2d.shape[0], : arr2d.shape[1]].set(arr2d)


def _conv_as_matrix_nchw(w_oihw, b, stride, h_in, w_in):
    """Fold Conv2d(padding=k//2, stride) into a dense NCHW->NCHW matrix (init-time).

    Returns (M, b_row, oh, ow) with  nchw_flat(conv(x)) == nchw_flat(x) @ M + b_row.
    Built by pushing the identity basis through the conv (exact, zero-pad baked in).
    Because both sides are NCHW-flat, the module's flatten(start_dim=1) needs no
    extra permutation and the wrapper needs no input transpose.
    """
    cout, cin, kh, kw = w_oihw.shape
    pad = kh // 2
    eye = jnp.eye(cin * h_in * w_in, dtype=jnp.float32).reshape(-1, cin, h_in, w_in)
    probe = jax.lax.conv_general_dilated(
        eye, w_oihw.astype(jnp.float32), window_strides=(stride, stride),
        padding=[(pad, pad), (pad, pad)],
        dimension_numbers=("NCHW", "OIHW", "NCHW"),
        precision=jax.lax.Precision.HIGHEST)
    oh, ow = probe.shape[2], probe.shape[3]
    mat = probe.reshape(cin * h_in * w_in, cout * oh * ow)
    b_row = jnp.repeat(b, oh * ow).reshape(1, cout * oh * ow)   # channel-major bias
    return mat, b_row, oh, ow


def init_params(key, input_dims, num_actions, conv_layer_sizes, fc_layer_sizes,
                strides, filter_sizes):
    width, height, num_channels = input_dims
    sqrt2 = float(jnp.sqrt(jnp.float32(2.0)))

    mats_f32, bias_rows, acts = [], [], []
    raw_convs, raw_fcs = [], []               # unfolded copies for verification

    h, w, c = height, width, num_channels
    for i, k in enumerate(conv_layer_sizes):
        key, k1, k2 = jax.random.split(key, 3)
        fan_in = c * k * k
        bound = 1.0 / (fan_in ** 0.5)
        w_oihw = jax.random.uniform(k1, (filter_sizes[i], c, k, k), jnp.float32,
                                    -bound, bound) * sqrt2      # ConvBlock: weight *= sqrt(2)
        b = jax.random.uniform(k2, (filter_sizes[i],), jnp.float32, -bound, bound)
        raw_convs.append((w_oihw, b, strides[i]))
        mat, b_row, oh, ow = _conv_as_matrix_nchw(w_oihw, b, strides[i], h, w)
        mats_f32.append(mat)
        bias_rows.append(b_row)
        acts.append("relu")                   # BatchNorm2d exists in module but is unused in forward
        h, w, c = oh, ow, filter_sizes[i]

    if len(conv_layer_sizes) != 0:
        in_size = 324                         # hard-coded in the PyTorch module
        assert in_size == c * h * w, (
            f"conv config produces {c * h * w} features; module hard-codes 324")
    else:
        in_size = width * height * num_channels
    # TODO(synk): use_her goal concatenation not implemented (use_her=False path only)

    prev = in_size
    for i, out_size in enumerate(fc_layer_sizes):
        key, k1, k2 = jax.random.split(key, 3)
        bound = 1.0 / (prev ** 0.5)
        wfc = jax.random.uniform(k1, (prev, out_size), jnp.float32,
                                 -bound, bound) * sqrt2         # FCBlock: weight *= sqrt(2)
        bfc = jax.random.uniform(k2, (out_size,), jnp.float32, -bound, bound)
        raw_fcs.append((wfc, bfc, "tanh"))
        mats_f32.append(wfc)
        bias_rows.append(bfc.reshape(1, -1))
        acts.append("tanh")
        prev = out_size

    # Final plain nn.Linear -> num_actions + 1 (no activation, no sqrt(2)).
    key, k1, k2 = jax.random.split(key, 3)
    out_size = num_actions + 1
    bound = 1.0 / (prev ** 0.5)
    wfc = jax.random.uniform(k1, (prev, out_size), jnp.float32, -bound, bound)
    bfc = jax.random.uniform(k2, (out_size,), jnp.float32, -bound, bound)
    raw_fcs.append((wfc, bfc, "none"))
    mats_f32.append(wfc)
    bias_rows.append(bfc.reshape(1, -1))
    acts.append("none")

    # Lane-pad every chained width to a multiple of 128; bf16 copies for the MXU.
    in_pad = _round_up(mats_f32[0].shape[0], _LANES)
    weights_f32, biases, weights_bf16 = [], [], []
    prev_pad = in_pad
    for mat, brow in zip(mats_f32, bias_rows):
        n_pad = _round_up(mat.shape[1], _LANES)
        mat_p = _pad_to(mat, prev_pad, n_pad)
        weights_f32.append(mat_p)
        weights_bf16.append(mat_p.astype(jnp.bfloat16))
        biases.append(_pad_to(brow, 1, n_pad))
        prev_pad = n_pad

    return {"weights": tuple(weights_bf16), "biases": tuple(biases),
            "weights_f32": tuple(weights_f32), "acts": tuple(acts),
            "out_dim": out_size, "in_pad": in_pad,
            "raw": {"convs": raw_convs, "fcs": raw_fcs}}


# --------------------------- plain-JAX references ---------------------------- #

def _reference_forward(raw, x_nchw):
    """Direct re-implementation of PPONetwork.forward (verification only)."""
    x = x_nchw.astype(jnp.float32)
    for (w_oihw, b, stride) in raw["convs"]:
        pad = w_oihw.shape[2] // 2
        x = jax.lax.conv_general_dilated(
            x, w_oihw, window_strides=(stride, stride),
            padding=[(pad, pad), (pad, pad)],
            dimension_numbers=("NCHW", "OIHW", "NCHW"),
            precision=jax.lax.Precision.HIGHEST)
        x = jnp.maximum(x + b.reshape(1, -1, 1, 1), 0.0)
    x = x.reshape(x.shape[0], -1)             # flatten(start_dim=1), NCHW order
    for (wfc, bfc, act) in raw["fcs"]:
        x = jnp.dot(x, wfc, precision=jax.lax.Precision.HIGHEST) + bfc
        if act == "tanh":
            x = jnp.tanh(x)
    return x[:, 0], x[:, 1:]


def _folded_forward_f32(weights_f32, biases, acts, out_dim, in_pad, x_nchw):
    """All-f32 run of the folded/padded matrices (validates the fold exactly)."""
    n = x_nchw.shape[0]
    x = x_nchw.reshape(n, -1).astype(jnp.float32)
    h = jnp.zeros((n, in_pad), jnp.float32).at[:, : x.shape[1]].set(x)
    for wm, b, act in zip(weights_f32, biases, acts):
        h = jnp.dot(h, wm, precision=jax.lax.Precision.HIGHEST) + b
        if act == "relu":
            h = jnp.maximum(h, 0.0)
        elif act == "tanh":
            h = jnp.tanh(h)
    return h[:, 0], h[:, 1:out_dim]


# ----------------------------------- main ----------------------------------- #

if __name__ == "__main__":
    key = jax.random.PRNGKey(0)

    # Config consistent with the module's hard-coded in_size=324:
    # 18x18x2 input, two 3x3 convs (strides 2, 1), 4 filters each -> 4*9*9 = 324.
    input_dims = (18, 18, 2)            # (width, height, num_channels)
    num_actions = 4
    conv_layer_sizes = [3, 3]           # kernel sizes
    strides = [2, 1]
    filter_sizes = [4, 4]
    fc_layer_sizes = [32, 32]
    batch = 2

    kp, kx, kx2 = jax.random.split(key, 3)
    params = init_params(kp, input_dims, num_actions, conv_layer_sizes,
                         fc_layer_sizes, strides, filter_sizes)

    # PyTorch-style NCHW input: (batch, channels, height, width)
    x = jax.random.normal(
        kx, (batch, input_dims[2], input_dims[1], input_dims[0]), jnp.float32)

    value, policy = ppo_forward(params, x)
    jax.block_until_ready((value, policy))

    assert value.shape == (batch,), value.shape
    assert policy.shape == (batch, num_actions), policy.shape
    assert jnp.all(jnp.isfinite(value)) and jnp.all(jnp.isfinite(policy))

    # (1) Tight check: the folded conv matrices + lane padding are exact (f32).
    value_ref, policy_ref = _reference_forward(params["raw"], x)
    v_fold, p_fold = _folded_forward_f32(params["weights_f32"], params["biases"],
                                         params["acts"], params["out_dim"],
                                         params["in_pad"], x)
    assert jnp.allclose(v_fold, value_ref, rtol=1e-4, atol=1e-4)
    assert jnp.allclose(p_fold, policy_ref, rtol=1e-4, atol=1e-4)

    # (2) The fused Pallas kernel (bf16 MXU operands, f32 accumulation) vs f32 ref.
    assert jnp.allclose(value, value_ref, rtol=5e-2, atol=5e-2)
    assert jnp.allclose(policy, policy_ref, rtol=5e-2, atol=5e-2)

    # (3) Exercise the multi-tile batch grid (384 rows -> row_tile 256, grid=(2,)).
    x_big = jax.random.normal(
        kx2, (384, input_dims[2], input_dims[1], input_dims[0]), jnp.float32)
    v_big, p_big = ppo_forward(params, x_big)
    jax.block_until_ready((v_big, p_big))
    v_big_ref, p_big_ref = _reference_forward(params["raw"], x_big)
    assert v_big.shape == (384,) and p_big.shape == (384, num_actions)
    assert jnp.allclose(v_big, v_big_ref, rtol=5e-2, atol=5e-2)
    assert jnp.allclose(p_big, p_big_ref, rtol=5e-2, atol=5e-2)

    print("KERNEL_OK")
</pallas_src>

<mosaic_0001>
module attributes {stable_mosaic.version = 11 : i64} {
  func.func @_fused_mlp_kernel(%arg0: i32, %arg1: memref<8x768xf32, #tpu.memory_space<vmem>>, %arg2: memref<768x384xbf16, #tpu.memory_space<vmem>>, %arg3: memref<1x384xf32, #tpu.memory_space<vmem>>, %arg4: memref<384x384xbf16, #tpu.memory_space<vmem>>, %arg5: memref<1x384xf32, #tpu.memory_space<vmem>>, %arg6: memref<384x128xbf16, #tpu.memory_space<vmem>>, %arg7: memref<1x128xf32, #tpu.memory_space<vmem>>, %arg8: memref<128x128xbf16, #tpu.memory_space<vmem>>, %arg9: memref<1x128xf32, #tpu.memory_space<vmem>>, %arg10: memref<128x128xbf16, #tpu.memory_space<vmem>>, %arg11: memref<1x128xf32, #tpu.memory_space<vmem>>, %arg12: memref<8x128xf32, #tpu.memory_space<vmem>>) attributes {dimension_semantics = [#tpu.dimension_semantics<parallel>], iteration_bounds = array<i64: 1>, scalar_prefetch = 0 : i64, scratch_operands = 0 : i64, tpu.core_type = #tpu.core_type<tc>, window_params = [{transform_indices = @transform_0, window_bounds = array<i64: 8, 768>}, {pipeline_mode = #tpu.pipeline_mode<synchronous>, transform_indices = @transform_1, window_bounds = array<i64: 768, 384>}, {pipeline_mode = #tpu.pipeline_mode<synchronous>, transform_indices = @transform_2, window_bounds = array<i64: 1, 384>}, {pipeline_mode = #tpu.pipeline_mode<synchronous>, transform_indices = @transform_3, window_bounds = array<i64: 384, 384>}, {pipeline_mode = #tpu.pipeline_mode<synchronous>, transform_indices = @transform_4, window_bounds = array<i64: 1, 384>}, {pipeline_mode = #tpu.pipeline_mode<synchronous>, transform_indices = @transform_5, window_bounds = array<i64: 384, 128>}, {pipeline_mode = #tpu.pipeline_mode<synchronous>, transform_indices = @transform_6, window_bounds = array<i64: 1, 128>}, {pipeline_mode = #tpu.pipeline_mode<synchronous>, transform_indices = @transform_7, window_bounds = array<i64: 128, 128>}, {pipeline_mode = #tpu.pipeline_mode<synchronous>, transform_indices = @transform_8, window_bounds = array<i64: 1, 128>}, {pipeline_mode = #tpu.pipeline_mode<synchronous>, transform_indices = @transform_9, window_bounds = array<i64: 128, 128>}, {pipeline_mode = #tpu.pipeline_mode<synchronous>, transform_indices = @transform_10, window_bounds = array<i64: 1, 128>}, {transform_indices = @transform_11, window_bounds = array<i64: 8, 128>}]} {
    %c0 = arith.constant 0 : index
    %c0_0 = arith.constant 0 : index
    %0 = vector.load %arg1[%c0, %c0_0] : memref<8x768xf32, #tpu.memory_space<vmem>>, vector<8x768xf32>
    %c0_1 = arith.constant 0 : index
    %c0_2 = arith.constant 0 : index
    %1 = vector.load %arg2[%c0_1, %c0_2] : memref<768x384xbf16, #tpu.memory_space<vmem>>, vector<768x384xbf16>
    %c0_3 = arith.constant 0 : index
    %c0_4 = arith.constant 0 : index
    %2 = vector.load %arg3[%c0_3, %c0_4] : memref<1x384xf32, #tpu.memory_space<vmem>>, vector<1x384xf32>
    %3 = arith.truncf %0 : vector<8x768xf32> to vector<8x768xbf16>
    %cst = arith.constant dense<0.000000e+00> : vector<8x384xf32>
    %4 = tpu.matmul %3, %1, %cst {dimension_numbers = #tpu.dot_dimension_numbers<[1], [0], [0], [1], [0, 0, 1, 1], [], []>} : vector<8x768xbf16>, vector<768x384xbf16>, vector<8x384xf32> -> vector<8x384xf32>
    %5 = vector.broadcast %2 : vector<1x384xf32> to vector<8x384xf32>
    %6 = arith.addf %4, %5 : vector<8x384xf32>
    %cst_5 = arith.constant 0.000000e+00 : f32
    %7 = vector.broadcast %cst_5 : f32 to vector<8x384xf32>
    %8 = arith.maximumf %6, %7 : vector<8x384xf32>
    %c0_6 = arith.constant 0 : index
    %c0_7 = arith.constant 0 : index
    %9 = vector.load %arg4[%c0_6, %c0_7] : memref<384x384xbf16, #tpu.memory_space<vmem>>, vector<384x384xbf16>
    %c0_8 = arith.constant 0 : index
    %c0_9 = arith.constant 0 : index
    %10 = vector.load %arg5[%c0_8, %c0_9] : memref<1x384xf32, #tpu.memory_space<vmem>>, vector<1x384xf32>
    %11 = arith.truncf %8 : vector<8x384xf32> to vector<8x384xbf16>
    %cst_10 = arith.constant dense<0.000000e+00> : vector<8x384xf32>
    %12 = tpu.matmul %11, %9, %cst_10 {dimension_numbers = #tpu.dot_dimension_numbers<[1], [0], [0], [1], [0, 0, 1, 1], [], []>} : vector<8x384xbf16>, vector<384x384xbf16>, vector<8x384xf32> -> vector<8x384xf32>
    %13 = vector.broadcast %10 : vector<1x384xf32> to vector<8x384xf32>
    %14 = arith.addf %12, %13 : vector<8x384xf32>
    %cst_11 = arith.constant 0.000000e+00 : f32
    %15 = vector.broadcast %cst_11 : f32 to vector<8x384xf32>
    %16 = arith.maximumf %14, %15 : vector<8x384xf32>
    %c0_12 = arith.constant 0 : index
    %c0_13 = arith.constant 0 : index
    %17 = vector.load %arg6[%c0_12, %c0_13] : memref<384x128xbf16, #tpu.memory_space<vmem>>, vector<384x128xbf16>
    %c0_14 = arith.constant 0 : index
    %c0_15 = arith.constant 0 : index
    %18 = vector.load %arg7[%c0_14, %c0_15] : memref<1x128xf32, #tpu.memory_space<vmem>>, vector<1x128xf32>
    %19 = arith.truncf %16 : vector<8x384xf32> to vector<8x384xbf16>
    %cst_16 = arith.constant dense<0.000000e+00> : vector<8x128xf32>
    %20 = tpu.matmul %19, %17, %cst_16 {dimension_numbers = #tpu.dot_dimension_numbers<[1], [0], [0], [1], [0, 0, 1, 1], [], []>} : vector<8x384xbf16>, vector<384x128xbf16>, vector<8x128xf32> -> vector<8x128xf32>
    %21 = vector.broadcast %18 : vector<1x128xf32> to vector<8x128xf32>
    %22 = arith.addf %20, %21 : vector<8x128xf32>
    %23 = math.tanh %22 : vector<8x128xf32>
    %c0_17 = arith.constant 0 : index
    %c0_18 = arith.constant 0 : index
    %24 = vector.load %arg8[%c0_17, %c0_18] : memref<128x128xbf16, #tpu.memory_space<vmem>>, vector<128x128xbf16>
    %c0_19 = arith.constant 0 : index
    %c0_20 = arith.constant 0 : index
    %25 = vector.load %arg9[%c0_19, %c0_20] : memref<1x128xf32, #tpu.memory_space<vmem>>, vector<1x128xf32>
    %26 = arith.truncf %23 : vector<8x128xf32> to vector<8x128xbf16>
    %cst_21 = arith.constant dense<0.000000e+00> : vector<8x128xf32>
    %27 = tpu.matmul %26, %24, %cst_21 {dimension_numbers = #tpu.dot_dimension_numbers<[1], [0], [0], [1], [0, 0, 1, 1], [], []>} : vector<8x128xbf16>, vector<128x128xbf16>, vector<8x128xf32> -> vector<8x128xf32>
    %28 = vector.broadcast %25 : vector<1x128xf32> to vector<8x128xf32>
    %29 = arith.addf %27, %28 : vector<8x128xf32>
    %30 = math.tanh %29 : vector<8x128xf32>
    %c0_22 = arith.constant 0 : index
    %c0_23 = arith.constant 0 : index
    %31 = vector.load %arg10[%c0_22, %c0_23] : memref<128x128xbf16, #tpu.memory_space<vmem>>, vector<128x128xbf16>
    %c0_24 = arith.constant 0 : index
    %c0_25 = arith.constant 0 : index
    %32 = vector.load %arg11[%c0_24, %c0_25] : memref<1x128xf32, #tpu.memory_space<vmem>>, vector<1x128xf32>
    %33 = arith.truncf %30 : vector<8x128xf32> to vector<8x128xbf16>
    %cst_26 = arith.constant dense<0.000000e+00> : vector<8x128xf32>
    %34 = tpu.matmul %33, %31, %cst_26 {dimension_numbers = #tpu.dot_dimension_numbers<[1], [0], [0], [1], [0, 0, 1, 1], [], []>} : vector<8x128xbf16>, vector<128x128xbf16>, vector<8x128xf32> -> vector<8x128xf32>
    %35 = vector.broadcast %32 : vector<1x128xf32> to vector<8x128xf32>
    %36 = arith.addf %34, %35 : vector<8x128xf32>
    %c0_27 = arith.constant 0 : index
    %c0_28 = arith.constant 0 : index
    %37 = vector.load %arg12[%c0_27, %c0_28] : memref<8x128xf32, #tpu.memory_space<vmem>>, vector<8x128xf32>
    tpu.vector_store %arg12[%c0_27, %c0_28], %36 {strides = array<i32>} : memref<8x128xf32, #tpu.memory_space<vmem>>, vector<8x128xf32>,
    return
  }
  func.func @transform_0(%arg0: i32) -> (i32, i32) {
    %c0_i32 = arith.constant 0 : i32
    %c0_i32_0 = arith.constant 0 : i32
    return %arg0, %c0_i32 : i32, i32
  }
  func.func @transform_1(%arg0: i32) -> (i32, i32) {
    %c0_i32 = arith.constant 0 : i32
    %c0_i32_0 = arith.constant 0 : i32
    %c0_i32_1 = arith.constant 0 : i32
    return %c0_i32, %c0_i32_0 : i32, i32
  }
  func.func @transform_2(%arg0: i32) -> (i32, i32) {
    %c0_i32 = arith.constant 0 : i32
    %c0_i32_0 = arith.constant 0 : i32
    %c0_i32_1 = arith.constant 0 : i32
    return %c0_i32, %c0_i32_0 : i32, i32
  }
  func.func @transform_3(%arg0: i32) -> (i32, i32) {
    %c0_i32 = arith.constant 0 : i32
    %c0_i32_0 = arith.constant 0 : i32
    %c0_i32_1 = arith.constant 0 : i32
    return %c0_i32, %c0_i32_0 : i32, i32
  }
  func.func @transform_4(%arg0: i32) -> (i32, i32) {
    %c0_i32 = arith.constant 0 : i32
    %c0_i32_0 = arith.constant 0 : i32
    %c0_i32_1 = arith.constant 0 : i32
    return %c0_i32, %c0_i32_0 : i32, i32
  }
  func.func @transform_5(%arg0: i32) -> (i32, i32) {
    %c0_i32 = arith.constant 0 : i32
    %c0_i32_0 = arith.constant 0 : i32
    %c0_i32_1 = arith.constant 0 : i32
    return %c0_i32, %c0_i32_0 : i32, i32
  }
  func.func @transform_6(%arg0: i32) -> (i32, i32) {
    %c0_i32 = arith.constant 0 : i32
    %c0_i32_0 = arith.constant 0 : i32
    %c0_i32_1 = arith.constant 0 : i32
    return %c0_i32, %c0_i32_0 : i32, i32
  }
  func.func @transform_7(%arg0: i32) -> (i32, i32) {
    %c0_i32 = arith.constant 0 : i32
    %c0_i32_0 = arith.constant 0 : i32
    %c0_i32_1 = arith.constant 0 : i32
    return %c0_i32, %c0_i32_0 : i32, i32
  }
  func.func @transform_8(%arg0: i32) -> (i32, i32) {
    %c0_i32 = arith.constant 0 : i32
    %c0_i32_0 = arith.constant 0 : i32
    %c0_i32_1 = arith.constant 0 : i32
    return %c0_i32, %c0_i32_0 : i32, i32
  }
  func.func @transform_9(%arg0: i32) -> (i32, i32) {
    %c0_i32 = arith.constant 0 : i32
    %c0_i32_0 = arith.constant 0 : i32
    %c0_i32_1 = arith.constant 0 : i32
    return %c0_i32, %c0_i32_0 : i32, i32
  }
  func.func @transform_10(%arg0: i32) -> (i32, i32) {
    %c0_i32 = arith.constant 0 : i32
    %c0_i32_0 = arith.constant 0 : i32
    %c0_i32_1 = arith.constant 0 : i32
    return %c0_i32, %c0_i32_0 : i32, i32
  }
  func.func @transform_11(%arg0: i32) -> (i32, i32) {
    %c0_i32 = arith.constant 0 : i32
    %c0_i32_0 = arith.constant 0 : i32
    return %arg0, %c0_i32 : i32, i32
  }
}

</mosaic_0001>

<bundles_post_ra>
// kernel: _ppo_forward_impl.1
= control target key start
LH: loop header
LB: loop body
LE: loop exit
PB: predicated region body
PF: predicated region fallthrough
CT: control target
= control target key end

     0   :  { %16 = vsyncpa [#allocation3], 0  ;;  %s3682_s0 = inlined_call_operand.vmem [shape: f32[8,768], index: 0, kind: input, shape index: {}]   ;;  %s3683_s1 = inlined_call_operand.hbm [shape: bf16[768,384], index: 1, kind: input, shape index: {}]   ;;  %s3684_s2 = inlined_call_operand.vmem [shape: f32[1,384], index: 2, kind: input, shape index: {}]   ;;  %s3685_s3 = inlined_call_operand.hbm [shape: bf16[384,384], index: 3, kind: input, shape index: {}]   ;;  %s3686_s4 = inlined_call_operand.vmem [shape: f32[1,384], index: 4, kind: input, shape index: {}]   ;;  %s3687_s5 = inlined_call_operand.vmem [shape: bf16[384,128], index: 5, kind: input, shape index: {}]   ;;  %s3688_s6 = inlined_call_operand.vmem [shape: f32[1,128], index: 6, kind: input, shape index: {}]   ;;  %s3689_s7 = inlined_call_operand.vmem [shape: bf16[128,128], index: 7, kind: input, shape index: {}]   ;;  %s3690_s8 = inlined_call_operand.vmem [shape: f32[1,128], index: 8, kind: input, shape index: {}]   ;;  %s3691_s9 = inlined_call_operand.vmem [shape: bf16[128,128], index: 9, kind: input, shape index: {}]   ;;  %s3692_s10 = inlined_call_operand.vmem [shape: f32[1,128], index: 10, kind: input, shape index: {}]   ;;  %s3693_s11 = inlined_call_operand.vmem [shape: f32[8,128], index: 11, kind: output, shape index: {}]  }
   0x1   :  { %17 = vsyncpa [#allocation5], 0  ;;  %s3370_s17 = smov [#allocation2]   ;;  %s3322_s21 = scalar_lea.hbm %s3683_s1, 18432 }
   0x2   :  { %s25_s18 = sshll.u32 %s3370_s17, 4  ;;  %p3323_p0 = scmp.ne.s32.totalorder %s3683_s1, %s3322_s21  ;;  %s26_s18 = int_to_ptr.vmem [resolvable:$true] %s25_s18 }
   0x3   :  { %p3326_p1 = scmp.lt.u32.totalorder %s3322_s21, %s3683_s1 }
   0x5   :  { %p3328_p2 = pnand %p3326_p1, %p3323_p0 }
   0x7   :  { %3331 = shalt.err (!%p3328_p2)
}
   0x8   :  { %s3332_s26 = scalar_lea.vmem %s26_s18, 18432  ;;  %p3337_p4 = scmp.lt.s32.totalorder %s26_s18, %s26_s18 }
   0x9   :  { %p3333_p3 = scmp.ne.s32.totalorder %s26_s18, %s3332_s26  ;;  %p3338_p5 = scmp.lt.s32.totalorder %s3332_s26, %s3332_s26 }
   0xb   :  { %p3339_p6 = por %p3338_p5, %p3337_p4 }
   0xd   :  { %p3340_p7 = pnand %p3339_p6, %p3333_p3 }
   0xf   :  { %3343 = shalt.err (!%p3340_p7)
}
  0x10   :  { %s3371_s27 = smov 192   ;;  %s3372_s28 = smov 12  }
  0x11   :  { %31 = dma.hbm_to_vmem [thread:$0]  %s3683_s1, 18432, %s26_s18, [#allocation3], %s3371_s27, %s3371_s27, %s3372_s28  }
  0x12   :  { %s3373_s12 = smov [#allocation4]   ;;  %s3344_s16 = scalar_lea.hbm %s3685_s3, 9216 }
  0x13   :  { %s39_s13 = sshll.u32 %s3373_s12, 4  ;;  %p3345_p8 = scmp.ne.s32.totalorder %s3685_s3, %s3344_s16  ;;  %s40_s13 = int_to_ptr.vmem [resolvable:$true] %s39_s13 }
  0x14   :  { %p3348_p9 = scmp.lt.u32.totalorder %s3344_s16, %s3685_s3 }
  0x16   :  { %p3350_p10 = pnand %p3348_p9, %p3345_p8 }
  0x18   :  { %3353 = shalt.err (!%p3350_p10)
}
  0x19   :  { %s3354_s22 = scalar_lea.vmem %s40_s13, 9216  ;;  %p3359_p12 = scmp.lt.s32.totalorder %s40_s13, %s40_s13 }
  0x1a   :  { %p3355_p11 = scmp.ne.s32.totalorder %s40_s13, %s3354_s22  ;;  %p3360_p13 = scmp.lt.s32.totalorder %s3354_s22, %s3354_s22 }
  0x1c   :  { %p3361_p0 = por %p3360_p13, %p3359_p12 }
  0x1e   :  { %p3362_p1 = pnand %p3361_p0, %p3355_p11 }
  0x20   :  { %3365 = shalt.err (!%p3362_p1)
}
  0x21   :  { %45 = dma.hbm_to_vmem [thread:$0]  %s3685_s3, 9216, %s40_s13, [#allocation5], %s3371_s27, %s3371_s27, %s3372_s28  }
  0x22   :  { %3366 = dma.done.wait [#allocation3], 18432  }
  0x23   :  { %3367 = vsyncadd [#allocation3], 4294948864 }
  0x24   :  { %3368 = dma.done.wait [#allocation5], 9216  }
  0x25   :  { %3369 = vsyncadd [#allocation5], 4294958080  ;;  %v2990_v0 = vld [vmem:[#allocation2 + $0x4] ss:$12 sps:$4 sm:$0xff]   ;;  %v2992_v1 = vld [vmem:[#allocation2] ss:$12 sps:$4 sm:$0xff]  }
  0x26   :  { %1056 = vmatprep.subr.bf16.mxu0 %v2990_v0  ;;  %v2993_v2 = vld [vmem:[#allocation2 + $0x1c] ss:$12 sps:$4 sm:$0xff]   ;;  %v2995_v3 = vld [vmem:[#allocation2 + $0x18] ss:$12 sps:$4 sm:$0xff]   ;;  %v2996_v4 = vld [vmem:[#allocation2 + $0x34] ss:$12 sps:$4 sm:$0xff]  }
  0x27   :  { %1057 = vmatpush1.bf16.msra.mxu0 %v2992_v1  ;;  %v2998_v5 = vld [vmem:[#allocation2 + $0x30] ss:$12 sps:$4 sm:$0xff]   ;;  %v2999_v6 = vld [vmem:[#allocation2 + $0x4c] ss:$12 sps:$4 sm:$0xff]   ;;  %v3001_v7 = vld [vmem:[#allocation2 + $0x48] ss:$12 sps:$4 sm:$0xff]  }
  0x28   :  { %1058 = vmatprep.subr.bf16.mxu0 %v2993_v2  ;;  %v3002_v8 = vld [vmem:[#allocation2 + $0x64] ss:$12 sps:$4 sm:$0xff]   ;;  %v3004_v9 = vld [vmem:[#allocation2 + $0x60] ss:$12 sps:$4 sm:$0xff]   ;;  %v3005_v10 = vld [vmem:[#allocation2 + $0x7c] ss:$12 sps:$4 sm:$0xff]  }
  0x29   :  { %v3007_v11 = vld [vmem:[#allocation2 + $0x78] ss:$12 sps:$4 sm:$0xff]   ;;  %v3008_v12 = vld [vmem:[#allocation2 + $0x94] ss:$12 sps:$4 sm:$0xff]   ;;  %v68_v13 = vld [vmem:[%s3682_s0 + $0x8] sm:$0xff]  ;;  %vm3376_vm0 = vmmov 0  }
  0x2a   :  { %v3010_v14 = vld [vmem:[#allocation2 + $0x90] ss:$12 sps:$4 sm:$0xff]   ;;  %v267_v15 = vpack.c.bf16 %v68_v13, %v68_v13  ;;  %v3011_v16 = vld [vmem:[#allocation2 + $0xac] ss:$12 sps:$4 sm:$0xff]   ;;  %v3041_v17 = vld [vmem:[#allocation2 + $0xc8] ss:$12 sps:$4 sm:$0xff]  }
  0x2b   :  { %1059 = vmatpush1.bf16.msra.mxu0 %v2995_v3  ;;  %v3013_v18 = vld [vmem:[#allocation2 + $0xa8] ss:$12 sps:$4 sm:$0xff]   ;;  %2741 = vmatprep.subr.bf16.mxu1 %v3041_v17  ;;  %v3046_v20 = vld [vmem:[#allocation2 + $0xe0] ss:$12 sps:$4 sm:$0xff]   ;;  %v3014_v21 = vld [vmem:[#allocation2 + $0xc4] ss:$12 sps:$4 sm:$0xff]  }
  0x2c   :  { %1060 = vmatprep.subr.bf16.mxu0 %v2996_v4  ;;  %1088 = vmatprep.mubr.bf16.mxu0 %v267_v15  ;;  %v3045_v19 = vld [vmem:[#allocation2 + $0x8] ss:$12 sps:$4 sm:$0xff]   ;;  %v3050_v22 = vld [vmem:[#allocation2 + $0x20] ss:$12 sps:$4 sm:$0xff]   ;;  %v3051_v23 = vld [vmem:[#allocation2 + $0xf8] ss:$12 sps:$4 sm:$0xff]  }
  0x2d   :  { %1211 = vmatprep.mubr.bf16.mxu1 %v267_v15  ;;  %2742 = vmatpush3.bf16.msra.mxu1 %v3045_v19  ;;  %v3016_v24 = vld [vmem:[#allocation2 + $0xc0] ss:$12 sps:$4 sm:$0xff]   ;;  %v3017_v25 = vld [vmem:[#allocation2 + $0xdc] ss:$12 sps:$4 sm:$0xff]   ;;  %v3055_v26 = vld [vmem:[#allocation2 + $0x38] ss:$12 sps:$4 sm:$0xff]  }
  0x2e   :  { %2743 = vmatprep.subr.bf16.mxu1 %v3046_v20  ;;  %v3056_v27 = vld [vmem:[#allocation2 + $0x110] ss:$12 sps:$4 sm:$0xff]   ;;  %v3019_v28 = vld [vmem:[#allocation2 + $0xd8] ss:$12 sps:$4 sm:$0xff]   ;;  %v3020_v29 = vld [vmem:[#allocation2 + $0xf4] ss:$12 sps:$4 sm:$0xff]  }
  0x2f   :  { %1061 = vmatpush1.bf16.msra.mxu0 %v2998_v5  ;;  %v3060_v30 = vld [vmem:[#allocation2 + $0x50] ss:$12 sps:$4 sm:$0xff]   ;;  %v3061_v31 = vld [vmem:[#allocation2 + $0x128] ss:$12 sps:$4 sm:$0xff]   ;;  %v3023_v33 = vld [vmem:[#allocation2 + $0x10c] ss:$12 sps:$4 sm:$0xff]  }
  0x30   :  { %1062 = vmatprep.subr.bf16.mxu0 %v2999_v6  ;;  %v3022_v32 = vld [vmem:[#allocation2 + $0xf0] ss:$12 sps:$4 sm:$0xff]   ;;  %v3065_v34 = vld [vmem:[#allocation2 + $0x68] ss:$12 sps:$4 sm:$0xff]   ;;  %v3066_v35 = vld [vmem:[#allocation2 + $0x140] ss:$12 sps:$4 sm:$0xff]  }
  0x31   :  { %2744 = vmatpush3.bf16.msra.mxu1 %v3050_v22  ;;  %v3025_v36 = vld [vmem:[#allocation2 + $0x108] ss:$12 sps:$4 sm:$0xff]   ;;  %v3026_v37 = vld [vmem:[#allocation2 + $0x124] ss:$12 sps:$4 sm:$0xff]   ;;  %v3070_v38 = vld [vmem:[#allocation2 + $0x80] ss:$12 sps:$4 sm:$0xff]  }
  0x32   :  { %2745 = vmatprep.subr.bf16.mxu1 %v3051_v23  ;;  %v3071_v39 = vld [vmem:[#allocation2 + $0x158] ss:$12 sps:$4 sm:$0xff]   ;;  %v3028_v40 = vld [vmem:[#allocation2 + $0x120] ss:$12 sps:$4 sm:$0xff]   ;;  %v3029_v41 = vld [vmem:[#allocation2 + $0x13c] ss:$12 sps:$4 sm:$0xff]  }
  0x33   :  { %1063 = vmatpush1.bf16.msra.mxu0 %v3001_v7  ;;  %v3075_v42 = vld [vmem:[#allocation2 + $0x98] ss:$12 sps:$4 sm:$0xff]   ;;  %v3076_v43 = vld [vmem:[#allocation2 + $0x170] ss:$12 sps:$4 sm:$0xff]   ;;  %v3032_v45 = vld [vmem:[#allocation2 + $0x154] ss:$12 sps:$4 sm:$0xff]  }
  0x34   :  { %1064 = vmatprep.subr.bf16.mxu0 %v3002_v8  ;;  %v3031_v44 = vld [vmem:[#allocation2 + $0x138] ss:$12 sps:$4 sm:$0xff]   ;;  %v3080_v46 = vld [vmem:[#allocation2 + $0xb0] ss:$12 sps:$4 sm:$0xff]   ;;  %v3081_v47 = vld [vmem:[#allocation2 + $0x248] ss:$12 sps:$4 sm:$0xff]  }
  0x35   :  { %2746 = vmatpush3.bf16.msra.mxu1 %v3055_v26  ;;  %v67_v48 = vld [vmem:[%s3682_s0] sm:$0xff]  ;;  %v3034_v49 = vld [vmem:[#allocation2 + $0x150] ss:$12 sps:$4 sm:$0xff]   ;;  %v3035_v50 = vld [vmem:[#allocation2 + $0x16c] ss:$12 sps:$4 sm:$0xff]  }
  0x36   :  { %2747 = vmatprep.subr.bf16.mxu1 %v3056_v27  ;;  %v3085_v51 = vld [vmem:[#allocation2 + $0x188] ss:$12 sps:$4 sm:$0xff]   ;;  %v266_v52 = vpack.c.bf16 %v67_v48, %v67_v48  ;;  %v3086_v53 = vld [vmem:[#allocation2 + $0x260] ss:$12 sps:$4 sm:$0xff]   ;;  %v3040_v55 = vld [vmem:[#allocation2 + $0x184] ss:$12 sps:$4 sm:$0xff]  }
  0x37   :  { %1065 = vmatpush1.bf16.msra.mxu0 %v3004_v9  ;;  %v3037_v54 = vld [vmem:[#allocation2 + $0x168] ss:$12 sps:$4 sm:$0xff]   ;;  %v3090_v56 = vld [vmem:[#allocation2 + $0x1a0] ss:$12 sps:$4 sm:$0xff]   ;;  %v3091_v57 = vld [vmem:[#allocation2 + $0x278] ss:$12 sps:$4 sm:$0xff]  }
  0x38   :  { %1066 = vmatprep.subr.bf16.mxu0 %v3005_v10  ;;  %v3038_v58 = vld [vmem:[#allocation2 + $0x180] ss:$12 sps:$4 sm:$0xff]   ;;  %v3044_v59 = vld [vmem:[#allocation2 + $0x19c] ss:$12 sps:$4 sm:$0xff]   ;;  %v3095_v60 = vld [vmem:[#allocation2 + $0x1b8] ss:$12 sps:$4 sm:$0xff]  }
  0x39   :  { %2748 = vmatpush3.bf16.msra.mxu1 %v3060_v30  ;;  %v3096_v61 = vld [vmem:[#allocation2 + $0x290] ss:$12 sps:$4 sm:$0xff]   ;;  %v3042_v62 = vld [vmem:[#allocation2 + $0x198] ss:$12 sps:$4 sm:$0xff]   ;;  %v3049_v63 = vld [vmem:[#allocation2 + $0x1b4] ss:$12 sps:$4 sm:$0xff]  }
  0x3a   :  { %2749 = vmatprep.subr.bf16.mxu1 %v3061_v31  ;;  %v3100_v0 = vld [vmem:[#allocation2 + $0x1d0] ss:$12 sps:$4 sm:$0xff]   ;;  %v3101_v1 = vld [vmem:[#allocation2 + $0x2a8] ss:$12 sps:$4 sm:$0xff]   ;;  %v3054_v3 = vld [vmem:[#allocation2 + $0x1cc] ss:$12 sps:$4 sm:$0xff]  }
  0x3b   :  { %1067 = vmatpush1.bf16.msra.mxu0 %v3007_v11  ;;  %v3047_v2 = vld [vmem:[#allocation2 + $0x1b0] ss:$12 sps:$4 sm:$0xff]   ;;  %v3105_v4 = vld [vmem:[#allocation2 + $0x1e8] ss:$12 sps:$4 sm:$0xff]   ;;  %v3106_v5 = vld [vmem:[#allocation2 + $0x2c0] ss:$12 sps:$4 sm:$0xff]  }
  0x3c   :  { %1068 = vmatprep.subr.bf16.mxu0 %v3008_v12  ;;  %v70_v6 = vld [vmem:[%s3682_s0 + $0x18] sm:$0xff]  ;;  %v3052_v7 = vld [vmem:[#allocation2 + $0x1c8] ss:$12 sps:$4 sm:$0xff]   ;;  %v3059_v8 = vld [vmem:[#allocation2 + $0x1e4] ss:$12 sps:$4 sm:$0xff]  }
  0x3d   :  { %2750 = vmatpush3.bf16.msra.mxu1 %v3065_v34  ;;  %v269_v9 = vpack.c.bf16 %v70_v6, %v70_v6  ;;  %v3110_v10 = vld [vmem:[#allocation2 + $0x200] ss:$12 sps:$4 sm:$0xff]   ;;  %v3111_v11 = vld [vmem:[#allocation2 + $0x2d8] ss:$12 sps:$4 sm:$0xff]   ;;  %v3064_v13 = vld [vmem:[#allocation2 + $0x1fc] ss:$12 sps:$4 sm:$0xff]  }
  0x3e   :  { %2751 = vmatprep.subr.bf16.mxu1 %v3066_v35  ;;  %v3057_v12 = vld [vmem:[#allocation2 + $0x1e0] ss:$12 sps:$4 sm:$0xff]   ;;  %v3116_v15 = vld [vmem:[#allocation2 + $0x2f0] ss:$12 sps:$4 sm:$0xff]   ;;  %v3121_v20 = vld [vmem:[#allocation2 + $0x3c8] ss:$12 sps:$4 sm:$0xff]  }
  0x3f   :  { %1069 = vmatpush1.bf16.msra.mxu0 %v3010_v14  ;;  %v3115_v14 = vld [vmem:[#allocation2 + $0x218] ss:$12 sps:$4 sm:$0xff]   ;;  %v3069_v17 = vld [vmem:[#allocation2 + $0x214] ss:$12 sps:$4 sm:$0xff]   ;;  %v3067_v19 = vld [vmem:[#allocation2 + $0x210] ss:$12 sps:$4 sm:$0xff]  }
  0x40   :  { %1070 = vmatprep.subr.bf16.mxu0 %v3011_v16  ;;  %v3062_v16 = vld [vmem:[#allocation2 + $0x1f8] ss:$12 sps:$4 sm:$0xff]   ;;  %v3125_v23 = vld [vmem:[#allocation2 + $0x308] ss:$12 sps:$4 sm:$0xff]   ;;  %v3077_v30 = vld [vmem:[#allocation2 + $0x240] ss:$12 sps:$4 sm:$0xff]  }
  0x41   :  { %2752 = vmatpush3.bf16.msra.mxu1 %v3070_v38  ;;  %v3074_v22 = vld [vmem:[#allocation2 + $0x22c] ss:$12 sps:$4 sm:$0xff]   ;;  %v3072_v26 = vld [vmem:[#allocation2 + $0x228] ss:$12 sps:$4 sm:$0xff]   ;;  %v3079_v27 = vld [vmem:[#allocation2 + $0x244] ss:$12 sps:$4 sm:$0xff]  }
  0x42   :  { %2753 = vmatprep.subr.bf16.mxu1 %v3071_v39  ;;  %v3084_v31 = vld [vmem:[#allocation2 + $0x25c] ss:$12 sps:$4 sm:$0xff]   ;;  %v3082_v34 = vld [vmem:[#allocation2 + $0x258] ss:$12 sps:$4 sm:$0xff]   ;;  %v3089_v35 = vld [vmem:[#allocation2 + $0x274] ss:$12 sps:$4 sm:$0xff]  }
  0x43   :  { %1071 = vmatpush1.bf16.msra.mxu0 %v3013_v18  ;;  %v3120_v18 = vld [vmem:[#allocation2 + $0x230] ss:$12 sps:$4 sm:$0xff]   ;;  %v3094_v39 = vld [vmem:[#allocation2 + $0x28c] ss:$12 sps:$4 sm:$0xff]  }
  0x44   :  { %1072 = vmatprep.subr.bf16.mxu0 %v3014_v21  ;;  %v69_v21 = vld [vmem:[%s3682_s0 + $0x10] sm:$0xff]  ;;  %v3097_v48 = vld [vmem:[#allocation2 + $0x2a0] ss:$12 sps:$4 sm:$0xff]   ;;  %v3122_v6 = vld [vmem:[#allocation2 + $0x318] ss:$12 sps:$4 sm:$0xff]  }
  0x45   :  { %2754 = vmatpush3.bf16.msra.mxu1 %v3075_v42  ;;  %v3087_v38 = vld [vmem:[#allocation2 + $0x270] ss:$12 sps:$4 sm:$0xff]   ;;  %v3146_v42 = vld [vmem:[#allocation2 + $0x440] ss:$12 sps:$4 sm:$0xff]  }
  0x46   :  { %2755 = vmatprep.subr.bf16.mxu1 %v3076_v43 }
  0x47   :  { %1073 = vmatpush1.bf16.msra.mxu0 %v3016_v24  ;;  %v3473_v24 = vpack.c.bf16 %v69_v21, %v69_v21  ;;  %v3147_v21 = vld [vmem:[#allocation2 + $0x390] ss:$12 sps:$4 sm:$0xff]  }
  0x48   :  { %1074 = vmatprep.subr.bf16.mxu0 %v3017_v25  ;;  %v3126_v25 = vld [vmem:[#allocation2 + $0x3e0] ss:$12 sps:$4 sm:$0xff]  }
  0x49   :  { %2756 = vmatpush3.bf16.msra.mxu1 %v3080_v46  ;;  %v3150_v46 = vld [vmem:[#allocation2 + $0x380] ss:$12 sps:$4 sm:$0xff]  }
  0x4a   :  { %2763 = vmatprep.subr.bf16.mxu1 %v3081_v47  ;;  %v3151_v47 = vld [vmem:[#allocation2 + $0x458] ss:$12 sps:$4 sm:$0xff]  }
  0x4b   :  { %1075 = vmatpush1.bf16.msra.mxu0 %v3019_v28  ;;  %v3130_v28 = vld [vmem:[#allocation2 + $0x320] ss:$12 sps:$4 sm:$0xff]  }
  0x4c   :  { %1076 = vmatprep.subr.bf16.mxu0 %v3020_v29  ;;  %1212 = vmatmul.mubr.bf16.vlgmr.msra.gmra.mrb[0].mxu1 %v266_v52  ;;  %v3131_v29 = vld [vmem:[#allocation2 + $0x3f8] ss:$12 sps:$4 sm:$0xff]  }
  0x4d   :  { %2764 = vmatpush3.bf16.msra.mxu1 %v3085_v51  ;;  %1251 = vmatprep.mubr.bf16.mxu1 %v269_v9  ;;  %v3156_v51 = vld [vmem:[#allocation2 + $0x470] ss:$12 sps:$4 sm:$0xff]  }
  0x4e   :  { %2765 = vmatprep.subr.bf16.mxu1 %v3086_v53  ;;  %v3109_v53 = vld [vmem:[#allocation2 + $0x2d4] ss:$12 sps:$4 sm:$0xff]  }
  0x4f   :  { %1077 = vmatpush1.bf16.msra.mxu0 %v3022_v32  ;;  %v3135_v32 = vld [vmem:[#allocation2 + $0x338] ss:$12 sps:$4 sm:$0xff]  }
  0x50   :  { %1078 = vmatprep.subr.bf16.mxu0 %v3023_v33  ;;  %v3136_v33 = vld [vmem:[#allocation2 + $0x410] ss:$12 sps:$4 sm:$0xff]  }
  0x51   :  { %2766 = vmatpush3.bf16.msra.mxu1 %v3090_v56  ;;  %v3184_v56 = vld [vmem:[#allocation4 + $0x4] ss:$12 sps:$4 sm:$0xff]  }
  0x52   :  { %2767 = vmatprep.subr.bf16.mxu1 %v3091_v57  ;;  %v3107_v57 = vld [vmem:[#allocation2 + $0x2d0] ss:$12 sps:$4 sm:$0xff]  }
  0x53   :  { %1079 = vmatpush1.bf16.msra.mxu0 %v3025_v36  ;;  %v3140_v36 = vld [vmem:[#allocation2 + $0x350] ss:$12 sps:$4 sm:$0xff]  }
  0x54   :  { %1080 = vmatprep.subr.bf16.mxu0 %v3026_v37  ;;  %v3141_v37 = vld [vmem:[#allocation2 + $0x428] ss:$12 sps:$4 sm:$0xff]  }
  0x55   :  { %2768 = vmatpush3.bf16.msra.mxu1 %v3095_v60  ;;  %v3182_v60 = vld [vmem:[#allocation4] ss:$12 sps:$4 sm:$0xff]  }
  0x56   :  { %2769 = vmatprep.subr.bf16.mxu1 %v3096_v61  ;;  %v3187_v61 = vld [vmem:[#allocation4 + $0x1c] ss:$12 sps:$4 sm:$0xff]  }
  0x57   :  { %1081 = vmatpush1.bf16.msra.mxu0 %v3028_v40  ;;  %v3145_v40 = vld [vmem:[#allocation2 + $0x368] ss:$12 sps:$4 sm:$0xff]  }
  0x58   :  { %1082 = vmatprep.subr.bf16.mxu0 %v3029_v41  ;;  %v72_v41 = vld [vmem:[%s3682_s0 + $0x28] sm:$0xff] }
  0x59   :  { %2770 = vmatpush3.bf16.msra.mxu1 %v3100_v0  ;;  %v271_v43 = vpack.c.bf16 %v72_v41, %v72_v41  ;;  %v3185_v0 = vld [vmem:[#allocation4 + $0x18] ss:$12 sps:$4 sm:$0xff]   ;;  %v3179_v41 = vld [vmem:[#allocation2 + $0x468] ss:$12 sps:$4 sm:$0xff]  }
  0x5a   :  { %2771 = vmatprep.subr.bf16.mxu1 %v3101_v1  ;;  %v3190_v1 = vld [vmem:[#allocation4 + $0x34] ss:$12 sps:$4 sm:$0xff]  }
  0x5b   :  { %1083 = vmatpush1.bf16.msra.mxu0 %v3031_v44  ;;  %v3092_v44 = vld [vmem:[#allocation2 + $0x288] ss:$12 sps:$4 sm:$0xff]  }
  0x5c   :  { %1084 = vmatprep.subr.bf16.mxu0 %v3032_v45  ;;  %v3099_v45 = vld [vmem:[#allocation2 + $0x2a4] ss:$12 sps:$4 sm:$0xff]  }
  0x5d   :  { %2772 = vmatpush3.bf16.msra.mxu1 %v3105_v4  ;;  %v3188_v4 = vld [vmem:[#allocation4 + $0x30] ss:$12 sps:$4 sm:$0xff]  }
  0x5e   :  { %2773 = vmatprep.subr.bf16.mxu1 %v3106_v5  ;;  %v3193_v5 = vld [vmem:[#allocation4 + $0x4c] ss:$12 sps:$4 sm:$0xff]  }
  0x5f   :  { %1085 = vmatpush1.bf16.msra.mxu0 %v3034_v49  ;;  %v3104_v49 = vld [vmem:[#allocation2 + $0x2bc] ss:$12 sps:$4 sm:$0xff]  }
  0x60   :  { %1086 = vmatprep.subr.bf16.mxu0 %v3035_v50  ;;  %v3155_v50 = vld [vmem:[#allocation2 + $0x398] ss:$12 sps:$4 sm:$0xff]  }
  0x61   :  { %2774 = vmatpush3.bf16.msra.mxu1 %v3110_v10  ;;  %v3127_v10 = vld [vmem:[#allocation2 + $0x330] ss:$12 sps:$4 sm:$0xff]  }
  0x62   :  { %2775 = vmatprep.subr.bf16.mxu1 %v3111_v11  ;;  %v3134_v11 = vld [vmem:[#allocation2 + $0x34c] ss:$12 sps:$4 sm:$0xff]  }
  0x63   :  { %1087 = vmatpush1.bf16.msra.mxu0 %v3037_v54  ;;  %v3160_v54 = vld [vmem:[#allocation2 + $0x3b0] ss:$12 sps:$4 sm:$0xff]  }
  0x64   :  { %1097 = vmatprep.subr.bf16.mxu0 %v3040_v55  ;;  %v71_v55 = vld [vmem:[%s3682_s0 + $0x20] sm:$0xff] }
  0x65   :  { %2776 = vmatpush3.bf16.msra.mxu1 %v3115_v14  ;;  %v3139_v14 = vld [vmem:[#allocation2 + $0x364] ss:$12 sps:$4 sm:$0xff]  }
  0x66   :  { %1089 = vmatmul.mubr.bf16.vlgmr.msra.gmra.mrb[0].mxu0 %v266_v52  ;;  %2777 = vmatprep.subr.bf16.mxu1 %v3116_v15  ;;  %v3102_v52 = vld [vmem:[#allocation2 + $0x2b8] ss:$12 sps:$4 sm:$0xff]   ;;  %v3137_v15 = vld [vmem:[#allocation2 + $0x360] ss:$12 sps:$4 sm:$0xff]  }
  0x67   :  { %1098 = vmatpush1.bf16.msra.mxu0 %v3038_v58  ;;  %1129 = vmatprep.mubr.bf16.mxu0 %v269_v9  ;;  %v3114_v58 = vld [vmem:[#allocation2 + $0x2ec] ss:$12 sps:$4 sm:$0xff]   ;;  %v3196_v9 = vld [vmem:[#allocation4 + $0x64] ss:$12 sps:$4 sm:$0xff]  }
  0x68   :  { %1099 = vmatprep.subr.bf16.mxu0 %v3044_v59  ;;  %v3482_v59 = vpack.c.bf16 %v71_v55, %v71_v55  ;;  %v3224_v55 = vld [vmem:[#allocation4 + $0x110] ss:$12 sps:$4 sm:$0xff]  }
  0x69   :  { %2778 = vmatpush3.bf16.msra.mxu1 %v3120_v18  ;;  %v3149_v18 = vld [vmem:[#allocation2 + $0x394] ss:$12 sps:$4 sm:$0xff]  }
  0x6a   :  { %2785 = vmatprep.subr.bf16.mxu1 %v3121_v20  ;;  %v3199_v20 = vld [vmem:[#allocation4 + $0x7c] ss:$12 sps:$4 sm:$0xff]  }
  0x6b   :  { %1100 = vmatpush1.bf16.msra.mxu0 %v3042_v62  ;;  %v3112_v62 = vld [vmem:[#allocation2 + $0x2e8] ss:$12 sps:$4 sm:$0xff]  }
  0x6c   :  { %1101 = vmatprep.subr.bf16.mxu0 %v3049_v63  ;;  %1252 = vmatmul.mubr.bf16.vlgmr.msra.gmra.mrb[4].mxu1 %v3473_v24  ;;  %v3119_v63 = vld [vmem:[#allocation2 + $0x304] ss:$12 sps:$4 sm:$0xff]  }
  0x6d   :  { %2786 = vmatpush3.bf16.msra.mxu1 %v3125_v23  ;;  %1291 = vmatprep.mubr.bf16.mxu1 %v271_v43  ;;  %v3152_v23 = vld [vmem:[#allocation2 + $0x3a8] ss:$12 sps:$4 sm:$0xff]  }
  0x6e   :  { %2787 = vmatprep.subr.bf16.mxu1 %v3126_v25  ;;  %v3157_v25 = vld [vmem:[#allocation2 + $0x3c0] ss:$12 sps:$4 sm:$0xff]  }
  0x6f   :  { %1102 = vmatpush1.bf16.msra.mxu0 %v3047_v2  ;;  %v3117_v2 = vld [vmem:[#allocation2 + $0x300] ss:$12 sps:$4 sm:$0xff]  }
  0x70   :  { %1103 = vmatprep.subr.bf16.mxu0 %v3054_v3  ;;  %v3124_v3 = vld [vmem:[#allocation2 + $0x31c] ss:$12 sps:$4 sm:$0xff]  }
  0x71   :  { %2788 = vmatpush3.bf16.msra.mxu1 %v3130_v28  ;;  %v3166_v28 = vld [vmem:[#allocation2 + $0x3f4] ss:$12 sps:$4 sm:$0xff]  }
  0x72   :  { %2789 = vmatprep.subr.bf16.mxu1 %v3131_v29  ;;  %v3164_v29 = vld [vmem:[#allocation2 + $0x3f0] ss:$12 sps:$4 sm:$0xff]  }
  0x73   :  { %1104 = vmatpush1.bf16.msra.mxu0 %v3052_v7  ;;  %v3129_v7 = vld [vmem:[#allocation2 + $0x334] ss:$12 sps:$4 sm:$0xff]  }
  0x74   :  { %1105 = vmatprep.subr.bf16.mxu0 %v3059_v8  ;;  %v3191_v8 = vld [vmem:[#allocation4 + $0x48] ss:$12 sps:$4 sm:$0xff]  }
  0x75   :  { %2790 = vmatpush3.bf16.msra.mxu1 %v3135_v32  ;;  %v3172_v32 = vld [vmem:[#allocation2 + $0x424] ss:$12 sps:$4 sm:$0xff]  }
  0x76   :  { %2791 = vmatprep.subr.bf16.mxu1 %v3136_v33  ;;  %v3170_v33 = vld [vmem:[#allocation2 + $0x420] ss:$12 sps:$4 sm:$0xff]  }
  0x77   :  { %1106 = vmatpush1.bf16.msra.mxu0 %v3057_v12  ;;  %v3194_v12 = vld [vmem:[#allocation4 + $0x60] ss:$12 sps:$4 sm:$0xff]  }
  0x78   :  { %1107 = vmatprep.subr.bf16.mxu0 %v3064_v13  ;;  %v3132_v13 = vld [vmem:[#allocation2 + $0x348] ss:$12 sps:$4 sm:$0xff]  }
  0x79   :  { %2792 = vmatpush3.bf16.msra.mxu1 %v3140_v36  ;;  %v3202_v36 = vld [vmem:[#allocation4 + $0x94] ss:$12 sps:$4 sm:$0xff]  }
  0x7a   :  { %2793 = vmatprep.subr.bf16.mxu1 %v3141_v37  ;;  %v3173_v37 = vld [vmem:[#allocation2 + $0x438] ss:$12 sps:$4 sm:$0xff]  }
  0x7b   :  { %1108 = vmatpush1.bf16.msra.mxu0 %v3062_v16  ;;  %v3144_v16 = vld [vmem:[#allocation2 + $0x37c] ss:$12 sps:$4 sm:$0xff]  }
  0x7c   :  { %1109 = vmatprep.subr.bf16.mxu0 %v3069_v17  ;;  %v3142_v17 = vld [vmem:[#allocation2 + $0x378] ss:$12 sps:$4 sm:$0xff]  }
  0x7d   :  { %2794 = vmatpush3.bf16.msra.mxu1 %v3145_v40  ;;  %v3181_v40 = vld [vmem:[#allocation2 + $0x46c] ss:$12 sps:$4 sm:$0xff]  }
  0x7e   :  { %2795 = vmatprep.subr.bf16.mxu1 %v3146_v42  ;;  %v3203_v42 = vld [vmem:[#allocation4 + $0xa8] ss:$12 sps:$4 sm:$0xff]  }
  0x7f   :  { %1110 = vmatpush1.bf16.msra.mxu0 %v3067_v19  ;;  %v3197_v19 = vld [vmem:[#allocation4 + $0x78] ss:$12 sps:$4 sm:$0xff]  }
  0x80   :  { %1111 = vmatprep.subr.bf16.mxu0 %v3074_v22  ;;  %v3154_v22 = vld [vmem:[#allocation2 + $0x3ac] ss:$12 sps:$4 sm:$0xff]  }
  0x81   :  { %2796 = vmatpush3.bf16.msra.mxu1 %v3150_v46  ;;  %v3210_v46 = vld [vmem:[#allocation4 + $0x8] ss:$12 sps:$4 sm:$0xff]  }
  0x82   :  { %2797 = vmatprep.subr.bf16.mxu1 %v3151_v47  ;;  %v3214_v47 = vld [vmem:[#allocation4 + $0xe0] ss:$12 sps:$4 sm:$0xff]  }
  0x83   :  { %1112 = vmatpush1.bf16.msra.mxu0 %v3072_v26  ;;  %v3163_v26 = vld [vmem:[#allocation2 + $0x3dc] ss:$12 sps:$4 sm:$0xff]  }
  0x84   :  { %1113 = vmatprep.subr.bf16.mxu0 %v3079_v27  ;;  %v3161_v27 = vld [vmem:[#allocation2 + $0x3d8] ss:$12 sps:$4 sm:$0xff]  }
  0x85   :  { %2798 = vmatpush3.bf16.msra.mxu1 %v3155_v50  ;;  %v3215_v50 = vld [vmem:[#allocation4 + $0x20] ss:$12 sps:$4 sm:$0xff]  }
  0x86   :  { %2799 = vmatprep.subr.bf16.mxu1 %v3156_v51  ;;  %v3219_v51 = vld [vmem:[#allocation4 + $0xf8] ss:$12 sps:$4 sm:$0xff]  }
  0x87   :  { %1114 = vmatpush1.bf16.msra.mxu0 %v3077_v30  ;;  %v3169_v30 = vld [vmem:[#allocation2 + $0x40c] ss:$12 sps:$4 sm:$0xff]  }
  0x88   :  { %1115 = vmatprep.subr.bf16.mxu0 %v3084_v31  ;;  %v3167_v31 = vld [vmem:[#allocation2 + $0x408] ss:$12 sps:$4 sm:$0xff]  }
  0x89   :  { %2800 = vmatpush3.bf16.msra.mxu1 %v3160_v54  ;;  %v3220_v54 = vld [vmem:[#allocation4 + $0x38] ss:$12 sps:$4 sm:$0xff]  }
  0x8a   :  { %1802 = vmatprep.subr.bf16.mxu1 %v3184_v56  ;;  %v3216_v56 = vld [vmem:[#allocation4 + $0xf0] ss:$12 sps:$4 sm:$0xff]  }
  0x8b   :  { %1116 = vmatpush1.bf16.msra.mxu0 %v3082_v34  ;;  %v3175_v34 = vld [vmem:[#allocation2 + $0x43c] ss:$12 sps:$4 sm:$0xff]  }
  0x8c   :  { %1117 = vmatprep.subr.bf16.mxu0 %v3089_v35  ;;  %1292 = vmatmul.mubr.bf16.vlgmr.msra.gmra.mrb[8].mxu1 %v3482_v59  ;;  %v3200_v35 = vld [vmem:[#allocation4 + $0x90] ss:$12 sps:$4 sm:$0xff]  }
  0x8d   :  { %1803 = vmatpush1.bf16.msra.mxu1 %v3182_v60  ;;  %v3221_v60 = vld [vmem:[#allocation4 + $0x108] ss:$12 sps:$4 sm:$0xff]  }
  0x8e   :  { %1804 = vmatprep.subr.bf16.mxu1 %v3187_v61  ;;  %v3228_v61 = vld [vmem:[#allocation4 + $0x124] ss:$12 sps:$4 sm:$0xff]  }
  0x8f   :  { %1118 = vmatpush1.bf16.msra.mxu0 %v3087_v38  ;;  %v3178_v38 = vld [vmem:[#allocation2 + $0x454] ss:$12 sps:$4 sm:$0xff]  }
  0x90   :  { %1119 = vmatprep.subr.bf16.mxu0 %v3094_v39  ;;  %v3176_v39 = vld [vmem:[#allocation2 + $0x450] ss:$12 sps:$4 sm:$0xff]  }
  0x91   :  { %1805 = vmatpush1.bf16.msra.mxu1 %v3185_v0  ;;  %v3226_v0 = vld [vmem:[#allocation4 + $0x120] ss:$12 sps:$4 sm:$0xff]  }
  0x92   :  { %1806 = vmatprep.subr.bf16.mxu1 %v3190_v1  ;;  %v3233_v1 = vld [vmem:[#allocation4 + $0x13c] ss:$12 sps:$4 sm:$0xff]  }
  0x93   :  { %1120 = vmatpush1.bf16.msra.mxu0 %v3092_v44  ;;  %v3208_v44 = vld [vmem:[#allocation4 + $0xc4] ss:$12 sps:$4 sm:$0xff]  }
  0x94   :  { %1121 = vmatprep.subr.bf16.mxu0 %v3099_v45  ;;  %v3209_v45 = vld [vmem:[#allocation4 + $0xc8] ss:$12 sps:$4 sm:$0xff]  }
  0x95   :  { %1807 = vmatpush1.bf16.msra.mxu1 %v3188_v4 }
  0x96   :  { %1808 = vmatprep.subr.bf16.mxu1 %v3193_v5 }
  0x97   :  { %1122 = vmatpush1.bf16.msra.mxu0 %v3097_v48  ;;  %v3206_v48 = vld [vmem:[#allocation4 + $0xc0] ss:$12 sps:$4 sm:$0xff]  }
  0x98   :  { %1123 = vmatprep.subr.bf16.mxu0 %v3104_v49  ;;  %v3213_v49 = vld [vmem:[#allocation4 + $0xdc] ss:$12 sps:$4 sm:$0xff]  }
  0x99   :  { %1809 = vmatpush1.bf16.msra.mxu1 %v3191_v8 }
  0x9a   :  { %1810 = vmatprep.subr.bf16.mxu1 %v3196_v9  ;;  %v3238_v9 = vld [vmem:[#allocation4 + $0x154] ss:$12 sps:$4 sm:$0xff]  }
  0x9b   :  { %1124 = vmatpush1.bf16.msra.mxu0 %v3102_v52  ;;  %v3211_v52 = vld [vmem:[#allocation4 + $0xd8] ss:$12 sps:$4 sm:$0xff]  }
  0x9c   :  { %1125 = vmatprep.subr.bf16.mxu0 %v3109_v53  ;;  %v3218_v53 = vld [vmem:[#allocation4 + $0xf4] ss:$12 sps:$4 sm:$0xff]  }
  0x9d   :  { %1811 = vmatpush1.bf16.msra.mxu1 %v3194_v12  ;;  %v3240_v12 = vld [vmem:[#allocation4 + $0x98] ss:$12 sps:$4 sm:$0xff]  }
  0x9e   :  { %1812 = vmatprep.subr.bf16.mxu1 %v3199_v20 }
  0x9f   :  { %1126 = vmatpush1.bf16.msra.mxu0 %v3107_v57  ;;  %v3223_v57 = vld [vmem:[#allocation4 + $0x10c] ss:$12 sps:$4 sm:$0xff]  }
  0xa0   :  { %1127 = vmatprep.subr.bf16.mxu0 %v3114_v58  ;;  %v3225_v58 = vld [vmem:[#allocation4 + $0x50] ss:$12 sps:$4 sm:$0xff]  }
  0xa1   :  { %1813 = vmatpush1.bf16.msra.mxu1 %v3197_v19 }
  0xa2   :  { %1814 = vmatprep.subr.bf16.mxu1 %v3202_v36 }
  0xa3   :  { %1128 = vmatpush1.bf16.msra.mxu0 %v3112_v62  ;;  %v3230_v62 = vld [vmem:[#allocation4 + $0x68] ss:$12 sps:$4 sm:$0xff]  }
  0xa4   :  { %1138 = vmatprep.subr.bf16.mxu0 %v3119_v63  ;;  %v3234_v63 = vld [vmem:[#allocation4 + $0x140] ss:$12 sps:$4 sm:$0xff]  }
  0xa5   :  { %1815 = vmatpush1.bf16.msra.mxu1 %v3200_v35 }
  0xa6   :  { %1130 = vmatmul.mubr.bf16.vlgmr.msra.gmra.mrb[0].mxu0 %v3473_v24  ;;  %v3159_v24 = vld [vmem:[#allocation2 + $0x3c4] ss:$12 sps:$4 sm:$0xff]  }
  0xa7   :  { %1139 = vmatpush1.bf16.msra.mxu0 %v3117_v2  ;;  %1170 = vmatprep.mubr.bf16.mxu0 %v271_v43  ;;  %v3205_v43 = vld [vmem:[#allocation4 + $0xac] ss:$12 sps:$4 sm:$0xff]  }
  0xa8   :  { %1140 = vmatprep.subr.bf16.mxu0 %v3124_v3  ;;  %1816 = vmatprep.subr.bf16.mxu1 %v3205_v43  ;;  %v3235_v2 = vld [vmem:[#allocation4 + $0x80] ss:$12 sps:$4 sm:$0xff]   ;;  %v3231_v3 = vld [vmem:[#allocation4 + $0x138] ss:$12 sps:$4 sm:$0xff]  }
  0xa9   :  { %1817 = vmatpush1.bf16.msra.mxu1 %v3203_v42 }
  0xaa   :  { %1818 = vmatprep.subr.bf16.mxu1 %v3208_v44 }
  0xab   :  { %1141 = vmatpush1.bf16.msra.mxu0 %v3122_v6 }
  0xac   :  { %1142 = vmatprep.subr.bf16.mxu0 %v3129_v7 }
  0xad   :  { %1819 = vmatpush1.bf16.msra.mxu1 %v3206_v48 }
  0xae   :  { %1820 = vmatprep.subr.bf16.mxu1 %v3213_v49  ;;  %v3246_v49 = vld [vmem:[#allocation4 + $0x180] ss:$12 sps:$4 sm:$0xff]  }
  0xaf   :  { %1143 = vmatpush1.bf16.msra.mxu0 %v3127_v10  ;;  %v3236_v10 = vld [vmem:[#allocation4 + $0x150] ss:$12 sps:$4 sm:$0xff]  }
  0xb0   :  { %1144 = vmatprep.subr.bf16.mxu0 %v3134_v11  ;;  %v3239_v11 = vld [vmem:[#allocation4 + $0x158] ss:$12 sps:$4 sm:$0xff]  }
  0xb1   :  { %1821 = vmatpush1.bf16.msra.mxu1 %v3211_v52  ;;  %v3249_v52 = vld [vmem:[#allocation4 + $0x198] ss:$12 sps:$4 sm:$0xff]  }
  0xb2   :  { %1822 = vmatprep.subr.bf16.mxu1 %v3218_v53  ;;  %v3374_v53 = vmov 0  }
  0xb3   :  { %1145 = vmatpush1.bf16.msra.mxu0 %v3132_v13  ;;  %v3243_v13 = vld [vmem:[#allocation4 + $0x16c] ss:$12 sps:$4 sm:$0xff]  }
  0xb4   :  { %1146 = vmatprep.subr.bf16.mxu0 %v3139_v14  ;;  %v3241_v14 = vld [vmem:[#allocation4 + $0x168] ss:$12 sps:$4 sm:$0xff]  }
  0xb5   :  { %1823 = vmatpush1.bf16.msra.mxu1 %v3216_v56  ;;  %v3257_v56 = vld [vmem:[#allocation4 + $0x1cc] ss:$12 sps:$4 sm:$0xff]  }
  0xb6   :  { %1824 = vmatprep.subr.bf16.mxu1 %v3223_v57  ;;  %v3255_v57 = vld [vmem:[#allocation4 + $0x1c8] ss:$12 sps:$4 sm:$0xff]  }
  0xb7   :  { %1147 = vmatpush1.bf16.msra.mxu0 %v3137_v15  ;;  %v3244_v15 = vld [vmem:[#allocation4 + $0x170] ss:$12 sps:$4 sm:$0xff]  }
  0xb8   :  { %1148 = vmatprep.subr.bf16.mxu0 %v3144_v16  ;;  %v3245_v16 = vld [vmem:[#allocation4 + $0xb0] ss:$12 sps:$4 sm:$0xff]  }
  0xb9   :  { %1825 = vmatpush1.bf16.msra.mxu1 %v3221_v60  ;;  %v3263_v60 = vld [vmem:[#allocation4 + $0x1fc] ss:$12 sps:$4 sm:$0xff]  }
  0xba   :  { %1826 = vmatprep.subr.bf16.mxu1 %v3228_v61  ;;  %v3261_v61 = vld [vmem:[#allocation4 + $0x1f8] ss:$12 sps:$4 sm:$0xff]  }
  0xbb   :  { %1149 = vmatpush1.bf16.msra.mxu0 %v3142_v17  ;;  %v3248_v17 = vld [vmem:[#allocation4 + $0x184] ss:$12 sps:$4 sm:$0xff]  }
  0xbc   :  { %1150 = vmatprep.subr.bf16.mxu0 %v3149_v18  ;;  %v273_v18 = vlaneseq }
  0xbd   :  { %1827 = vmatpush1.bf16.msra.mxu1 %v3226_v0  ;;  %v3269_v0 = vld [vmem:[#allocation4 + $0x22c] ss:$12 sps:$4 sm:$0xff]  }
  0xbe   :  { %1828 = vmatprep.subr.bf16.mxu1 %v3233_v1  ;;  %v3487_v19 = vshrl.u32 %v273_v18, 7  ;;  %v3267_v1 = vld [vmem:[#allocation4 + $0x228] ss:$12 sps:$4 sm:$0xff]  }
  0xbf   :  { %1151 = vmatpush1.bf16.msra.mxu0 %v3147_v21  ;;  %v265_v21 = vld [vmem:[%s3684_s2] sm:$0x7]  ;;  %v3283_v18 = vld [vmem:[%s3687_s5 + $0x10] sm:$0xff]  }
  0xc0   :  { %1152 = vmatprep.subr.bf16.mxu0 %v3154_v22  ;;  %v283_v20 = vsub.s32 2, %v3487_v19  ;;  %v275_v36 = vsub.s32 0, %v3487_v19 }
  0xc1   :  { %1829 = vmatpush1.bf16.msra.mxu1 %v3231_v3  ;;  %v3270_v3 = vld [vmem:[#allocation4 + $0x188] ss:$12 sps:$4 sm:$0xff]  }
  0xc2   :  { %1830 = vmatprep.subr.bf16.mxu1 %v3238_v9  ;;  %v284_v22 = vrot.slane %v265_v21, %v283_v20  ;;  %v3274_v9 = vld [vmem:[#allocation4 + $0x1e8] ss:$12 sps:$4 sm:$0xff]  }
  0xc3   :  { %1153 = vmatpush1.bf16.msra.mxu0 %v3152_v23 }
  0xc4   :  { %1154 = vmatprep.subr.bf16.mxu0 %v3159_v24 }
  0xc5   :  { %1831 = vmatpush1.bf16.msra.mxu1 %v3236_v10  ;;  %v3275_v10 = vld [vmem:[#allocation4 + $0x200] ss:$12 sps:$4 sm:$0xff]  }
  0xc6   :  { %1832 = vmatprep.subr.bf16.mxu1 %v3243_v13  ;;  %v3278_v13 = vld [vmem:[%s3687_s5 + $0x40] sm:$0xff]  }
  0xc7   :  { %1155 = vmatpush1.bf16.msra.mxu0 %v3157_v25 }
  0xc8   :  { %1156 = vmatprep.subr.bf16.mxu0 %v3163_v26 }
  0xc9   :  { %1833 = vmatpush1.bf16.msra.mxu1 %v3241_v14  ;;  %v3279_v14 = vld [vmem:[%s3687_s5] sm:$0xff]  }
  0xca   :  { %1843 = vmatprep.subr.bf16.mxu1 %v3248_v17  ;;  %v3282_v17 = vld [vmem:[%s3687_s5 + $0x50] sm:$0xff]  }
  0xcb   :  { %1157 = vmatpush1.bf16.msra.mxu0 %v3161_v27 }
  0xcc   :  { %1158 = vmatprep.subr.bf16.mxu0 %v3166_v28 }
  0xcf   :  { %1159 = vmatpush1.bf16.msra.mxu0 %v3164_v29 }
  0xd0   :  { %1160 = vmatprep.subr.bf16.mxu0 %v3169_v30 }
  0xd3   :  { %1161 = vmatpush1.bf16.msra.mxu0 %v3167_v31 }
  0xd4   :  { %1162 = vmatprep.subr.bf16.mxu0 %v3172_v32 }
  0xd7   :  { %1163 = vmatpush1.bf16.msra.mxu0 %v3170_v33 }
  0xd8   :  { %1164 = vmatprep.subr.bf16.mxu0 %v3175_v34 }
  0xdb   :  { %1165 = vmatpush1.bf16.msra.mxu0 %v3173_v37  ;;  %v279_v37 = vsub.s32 1, %v3487_v19  ;;  %v3303_v19 = vld [vmem:[%s3689_s7 + $0x8] sm:$0xff]  }
  0xdc   :  { %1166 = vmatprep.subr.bf16.mxu0 %v3178_v38  ;;  %v276_v38 = vrot.slane %v265_v21, %v275_v36 }
  0xdf   :  { %1167 = vmatpush1.bf16.msra.mxu0 %v3176_v39  ;;  %v280_v39 = vrot.slane %v265_v21, %v279_v37  ;;  %v3284_v21 = vld [vmem:[%s3687_s5 + $0x58] sm:$0xff]  }
  0xe0   :  { %1168 = vmatprep.subr.bf16.mxu0 %v3181_v40 }
  0xe3   :  { %1169 = vmatpush1.bf16.msra.mxu0 %v3179_v41 }
  0xe4   :  { %2807 = vmatprep.subr.bf16.mxu0 %v3209_v45 }
  0xe6   :  { %1171 = vmatmul.mubr.bf16.vlgmr.msra.gmra.mrb[0].mxu0 %v3482_v59  ;;  %v3229_v59 = vld [vmem:[#allocation4 + $0x128] ss:$12 sps:$4 sm:$0xff]  }
  0xe7   :  { %2808 = vmatpush3.bf16.msra.mxu0 %v3210_v46 }
  0xe8   :  { %2809 = vmatprep.subr.bf16.mxu0 %v3214_v47 }
  0xeb   :  { %2810 = vmatpush3.bf16.msra.mxu0 %v3215_v50 }
  0xec   :  { %2811 = vmatprep.subr.bf16.mxu0 %v3219_v51  ;;  %v3251_v51 = vld [vmem:[#allocation4 + $0x19c] ss:$12 sps:$4 sm:$0xff]  }
  0xef   :  { %2812 = vmatpush3.bf16.msra.mxu0 %v3220_v54  ;;  %v3254_v54 = vld [vmem:[#allocation4 + $0x1b4] ss:$12 sps:$4 sm:$0xff]  }
  0xf0   :  { %2813 = vmatprep.subr.bf16.mxu0 %v3224_v55  ;;  %v3252_v55 = vld [vmem:[#allocation4 + $0x1b0] ss:$12 sps:$4 sm:$0xff]  }
  0xf3   :  { %2814 = vmatpush3.bf16.msra.mxu0 %v3225_v58  ;;  %v3260_v58 = vld [vmem:[#allocation4 + $0x1e4] ss:$12 sps:$4 sm:$0xff]  }
  0xf4   :  { %2815 = vmatprep.subr.bf16.mxu0 %v3229_v59  ;;  %v3258_v59 = vld [vmem:[#allocation4 + $0x1e0] ss:$12 sps:$4 sm:$0xff]  }
  0xf7   :  { %2816 = vmatpush3.bf16.msra.mxu0 %v3230_v62  ;;  %v3266_v62 = vld [vmem:[#allocation4 + $0x214] ss:$12 sps:$4 sm:$0xff]  }
  0xf8   :  { %2817 = vmatprep.subr.bf16.mxu0 %v3234_v63  ;;  %v3264_v63 = vld [vmem:[#allocation4 + $0x210] ss:$12 sps:$4 sm:$0xff]  }
  0xfb   :  { %2818 = vmatpush3.bf16.msra.mxu0 %v3235_v2 }
  0xfc   :  { %2819 = vmatprep.subr.bf16.mxu0 %v3239_v11  ;;  %v3276_v11 = vld [vmem:[#allocation4 + $0x218] ss:$12 sps:$4 sm:$0xff]  }
  0xff   :  { %2820 = vmatpush3.bf16.msra.mxu0 %v3240_v12  ;;  %v3277_v12 = vld [vmem:[#allocation4 + $0x230] ss:$12 sps:$4 sm:$0xff]  }
 0x100   :  { %2821 = vmatprep.subr.bf16.mxu0 %v3244_v15  ;;  %v3280_v15 = vld [vmem:[%s3687_s5 + $0x48] sm:$0xff]  }
 0x103   :  { %2822 = vmatpush3.bf16.msra.mxu0 %v3245_v16  ;;  %v3281_v16 = vld [vmem:[%s3687_s5 + $0x8] sm:$0xff]  }
 0x104   :  { %2838 = vmatprep.subr.bf16.mxu0 %v3278_v13 }
 0x11f   :  { %v2757_v4 = vpop.f32.mrb[0].mxu1 }
 0x120   :  { %v2758_v5 = vpop.f32.mrb[1].mxu1 }
 0x121   :  { %v2759_v6 = vadd.f32 %v2758_v5, %v2757_v4  ;;  %v2760_v7 = vpop.f32.mrb[2].mxu1  ;;  %v3375_v5 = vmov 0.0  }
 0x122   :  { %v2761_v8 = vpop.f32.mrb[3].mxu1  ;;  %v3272_v7 = vld [vmem:[#allocation4 + $0x1b8] ss:$12 sps:$4 sm:$0xff]  }
 0x123   :  { %v1214_v23 = vadd.f32 %v2759_v6, %v284_v22  ;;  %v3271_v6 = vld [vmem:[#allocation4 + $0x1a0] ss:$12 sps:$4 sm:$0xff]   ;;  %v3273_v8 = vld [vmem:[#allocation4 + $0x1d0] ss:$12 sps:$4 sm:$0xff]  }
 0x124   :  { %v3285_v22 = vld [vmem:[%s3687_s5 + $0x18] sm:$0xff]  }
 0x13f   :  { %v2779_v24 = vpop.f32.mrb[4].mxu1 }
 0x140   :  { %v2780_v25 = vpop.f32.mrb[5].mxu1 }
 0x141   :  { %v2781_v26 = vadd.f32 %v2780_v25, %v2779_v24  ;;  %v2782_v27 = vpop.f32.mrb[6].mxu1  ;;  %v3287_v24 = vld [vmem:[%s3687_s5 + $0x20] sm:$0xff]   ;;  %v3288_v25 = vld [vmem:[%s3687_s5 + $0x68] sm:$0xff]  }
 0x142   :  { %v2783_v28 = vpop.f32.mrb[7].mxu1  ;;  %v3290_v27 = vld [vmem:[%s3687_s5 + $0x70] sm:$0xff]  }
 0x143   :  { %v1254_v29 = vadd.f32 %v2781_v26, %v1214_v23  ;;  %v3286_v23 = vld [vmem:[%s3687_s5 + $0x60] sm:$0xff]   ;;  %v3289_v26 = vld [vmem:[%s3687_s5 + $0x28] sm:$0xff]   ;;  %v3291_v28 = vld [vmem:[%s3687_s5 + $0x30] sm:$0xff]  }
 0x15f   :  { %v2801_v30 = vpop.f32.mrb[8].mxu1 }
 0x160   :  { %v2802_v31 = vpop.f32.mrb[9].mxu1 }
 0x161   :  { %v2803_v32 = vadd.f32 %v2802_v31, %v2801_v30  ;;  %v2804_v33 = vpop.f32.mrb[10].mxu1  ;;  %v3293_v30 = vld [vmem:[%s3687_s5 + $0x38] sm:$0xff]   ;;  %v3294_v31 = vld [vmem:[%s3687_s5 + $0x80] sm:$0xff]  }
 0x162   :  { %v2805_v34 = vpop.f32.mrb[11].mxu1  ;;  %v3296_v33 = vld [vmem:[%s3687_s5 + $0x90] sm:$0xff]  }
 0x163   :  { %v1294_v35 = vadd.f32 %v2803_v32, %v1254_v29  ;;  %v3292_v29 = vld [vmem:[%s3687_s5 + $0x78] sm:$0xff]   ;;  %v3295_v32 = vld [vmem:[%s3687_s5 + $0x88] sm:$0xff]  }
 0x164   :  { %v3297_v34 = vld [vmem:[%s3687_s5 + $0x98] sm:$0xff]  }
 0x165   :  { %v1301_v2 = vmax.f32 %v1294_v35, 0.0  ;;  %v3298_v35 = vld [vmem:[%s3687_s5 + $0xa0] sm:$0xff]  }
 0x167   :  { %v1401_v4 = vpack.c.bf16 %v1301_v2, %v1301_v2  ;;  %v3302_v2 = vld [vmem:[%s3689_s7] sm:$0xff]  }
 0x1b9   :  { %v1172_v40 = vpop.f32.mrb[0].mxu0 }
 0x1ba   :  { %v2967_v41 = vadd.f32 %v1172_v40, %v276_v38  ;;  %v1174_v42 = vpop.f32.mrb[1].mxu0  ;;  %v3299_v38 = vld [vmem:[%s3687_s5 + $0xa8] sm:$0xff]   ;;  %v3301_v40 = vld [vmem:[%s3687_s5 + $0xb8] sm:$0xff]  }
 0x1bb   :  { %v2968_v43 = vadd.f32 %v1174_v42, %v280_v39  ;;  %v1176_v44 = vpop.f32.mrb[2].mxu0  ;;  %v3300_v39 = vld [vmem:[%s3687_s5 + $0xb0] sm:$0xff]  }
 0x1bc   :  { %v1299_v45 = vmax.f32 %v2967_v41, 0.0  ;;  %v1177_v46 = vpop.f32.mrb[3].mxu0 }
 0x1bd   :  { %v1300_v47 = vmax.f32 %v2968_v43, 0.0  ;;  %v1398_v46 = vld [vmem:[%s3686_s4] sm:$0x7] }
 0x1be   :  { %v1399_v50 = vpack.c.bf16 %v1299_v45, %v1299_v45 }
 0x1bf   :  { %v1400_v48 = vpack.c.bf16 %v1300_v47, %v1300_v47  ;;  %v1406_v47 = vrot.slane %v1398_v46, %v275_v36  ;;  %v1414_v36 = vrot.slane %v1398_v46, %v283_v20  ;;  %v3304_v20 = vld [vmem:[%s3689_s7 + $0x10] sm:$0xff]  }
 0x1c1   :  { %1834 = vmatprep.mubr.bf16.mxu1 %v1400_v48  ;;  %1916 = vmatprep.mubr.bf16.mxu0 %v1400_v48  ;;  %v1410_v48 = vrot.slane %v1398_v46, %v279_v37 }
 0x1c2   :  { %1835 = vmatmul.mubr.bf16.vlgmr.msra.gmra.mrb[12].mxu1 %v1399_v50  ;;  %1917 = vmatmul.mubr.bf16.vlgmr.msra.gmra.mrb[4].mxu0 %v1399_v50 }
 0x1c3   :  { %1844 = vmatpush1.bf16.msra.mxu1 %v3246_v49  ;;  %1875 = vmatprep.mubr.bf16.mxu1 %v3374_v53 }
 0x1c4   :  { %1845 = vmatprep.subr.bf16.mxu1 %v3251_v51  ;;  %2839 = vmatpush3.bf16.msra.mxu0 %v3279_v14 }
 0x1c5   :  { %2840 = vmatprep.subr.bf16.mxu0 %v3280_v15 }
 0x1c7   :  { %1846 = vmatpush1.bf16.msra.mxu1 %v3249_v52 }
 0x1c8   :  { %1847 = vmatprep.subr.bf16.mxu1 %v3254_v54  ;;  %2841 = vmatpush3.bf16.msra.mxu0 %v3281_v16 }
 0x1c9   :  { %2842 = vmatprep.subr.bf16.mxu0 %v3282_v17 }
 0x1cb   :  { %1848 = vmatpush1.bf16.msra.mxu1 %v3252_v55 }
 0x1cc   :  { %1849 = vmatprep.subr.bf16.mxu1 %v3257_v56  ;;  %2843 = vmatpush3.bf16.msra.mxu0 %v3283_v18  ;;  %v2698_v18 = vld [vmem:[%s3688_s6] ss:$0 sm:$0xff] }
 0x1cd   :  { %2844 = vmatprep.subr.bf16.mxu0 %v3284_v21 }
 0x1cf   :  { %1850 = vmatpush1.bf16.msra.mxu1 %v3255_v57 }
 0x1d0   :  { %1851 = vmatprep.subr.bf16.mxu1 %v3260_v58  ;;  %2845 = vmatpush3.bf16.msra.mxu0 %v3285_v22 }
 0x1d1   :  { %2846 = vmatprep.subr.bf16.mxu0 %v3286_v23 }
 0x1d3   :  { %1852 = vmatpush1.bf16.msra.mxu1 %v3258_v59 }
 0x1d4   :  { %1853 = vmatprep.subr.bf16.mxu1 %v3263_v60  ;;  %2847 = vmatpush3.bf16.msra.mxu0 %v3287_v24 }
 0x1d5   :  { %2848 = vmatprep.subr.bf16.mxu0 %v3288_v25 }
 0x1d7   :  { %1854 = vmatpush1.bf16.msra.mxu1 %v3261_v61 }
 0x1d8   :  { %1855 = vmatprep.subr.bf16.mxu1 %v3266_v62  ;;  %2849 = vmatpush3.bf16.msra.mxu0 %v3289_v26 }
 0x1d9   :  { %2850 = vmatprep.subr.bf16.mxu0 %v3290_v27 }
 0x1db   :  { %1856 = vmatpush1.bf16.msra.mxu1 %v3264_v63 }
 0x1dc   :  { %1857 = vmatprep.subr.bf16.mxu1 %v3269_v0  ;;  %2851 = vmatpush3.bf16.msra.mxu0 %v3291_v28 }
 0x1dd   :  { %2852 = vmatprep.subr.bf16.mxu0 %v3292_v29  ;;  %v3314_v29 = vld [vmem:[%s3691_s9 + $0x20] sm:$0xff]  }
 0x1df   :  { %1858 = vmatpush1.bf16.msra.mxu1 %v3267_v1 }
 0x1e0   :  { %2887 = vmatprep.subr.bf16.mxu1 %v3375_v5  ;;  %2853 = vmatpush3.bf16.msra.mxu0 %v3293_v30  ;;  %v3315_v30 = vld [vmem:[%s3691_s9 + $0x28] sm:$0xff]  }
 0x1e1   :  { %2927 = vmatprep.subr.bf16.mxu0 %v3375_v5 }
 0x1e2   :  { %1876 = vmatmul.mubr.bf16.vlgmr.msra.gmra.mrb[12].mxu1 %v1401_v4 }
 0x1e3   :  { %2888 = vmatpush3.bf16.msra.mxu1 %v3270_v3  ;;  %2903 = vmatprep.mubr.msk.bf16.mxu1 %vm3376_vm0, %v3375_v5  ;;  %v3305_v3 = vld [vmem:[%s3689_s7 + $0x18] sm:$0xff]  }
 0x1e4   :  { %2889 = vmatprep.subr.bf16.mxu1 %v3375_v5 }
 0x1e7   :  { %2890 = vmatpush3.bf16.msra.mxu1 %v3271_v6  ;;  %v3307_v6 = vld [vmem:[%s3689_s7 + $0x28] sm:$0xff]  }
 0x1e8   :  { %2891 = vmatprep.subr.bf16.mxu1 %v3375_v5 }
 0x1eb   :  { %2892 = vmatpush3.bf16.msra.mxu1 %v3272_v7  ;;  %v3308_v7 = vld [vmem:[%s3689_s7 + $0x30] sm:$0xff]  }
 0x1ec   :  { %2893 = vmatprep.subr.bf16.mxu1 %v3375_v5 }
 0x1ef   :  { %2894 = vmatpush3.bf16.msra.mxu1 %v3273_v8  ;;  %v3309_v8 = vld [vmem:[%s3689_s7 + $0x38] sm:$0xff]  }
 0x1f0   :  { %2895 = vmatprep.subr.bf16.mxu1 %v3375_v5 }
 0x1f3   :  { %2896 = vmatpush3.bf16.msra.mxu1 %v3274_v9  ;;  %v3310_v9 = vld [vmem:[%s3691_s9] sm:$0xff]  }
 0x1f4   :  { %2897 = vmatprep.subr.bf16.mxu1 %v3375_v5 }
 0x1f7   :  { %2898 = vmatpush3.bf16.msra.mxu1 %v3275_v10  ;;  %v3311_v10 = vld [vmem:[%s3691_s9 + $0x8] sm:$0xff]  }
 0x1f8   :  { %2899 = vmatprep.subr.bf16.mxu1 %v3375_v5 }
 0x1fb   :  { %2900 = vmatpush3.bf16.msra.mxu1 %v3276_v11  ;;  %v3312_v11 = vld [vmem:[%s3691_s9 + $0x10] sm:$0xff]  }
 0x1fc   :  { %2901 = vmatprep.subr.bf16.mxu1 %v3375_v5 }
 0x1ff   :  { %2902 = vmatpush3.bf16.msra.mxu1 %v3277_v12  ;;  %v3313_v12 = vld [vmem:[%s3691_s9 + $0x18] sm:$0xff]  }
 0x200   :  { %2907 = vmatprep.subr.bf16.mxu1 %v3375_v5 }
 0x202   :  { %2904 = vmatmul.mubr.bf16.vlgmr.msra.gmra.mrb[16].mxu1 %v1401_v4  ;;  %v3306_v4 = vld [vmem:[%s3689_s7 + $0x20] sm:$0xff]  }
 0x203   :  { %2923 = vmatprep.mubr.msk.bf16.mxu1 %vm3376_vm0, %v3375_v5  ;;  %2908 = vmatpush3.bf16.msra.mxu1 %v3294_v31  ;;  %v3316_v31 = vld [vmem:[%s3691_s9 + $0x30] sm:$0xff]  }
 0x204   :  { %2909 = vmatprep.subr.bf16.mxu1 %v3375_v5 }
 0x207   :  { %2910 = vmatpush3.bf16.msra.mxu1 %v3295_v32  ;;  %v3317_v32 = vld [vmem:[%s3691_s9 + $0x38] sm:$0xff]  }
 0x208   :  { %2911 = vmatprep.subr.bf16.mxu1 %v3375_v5 }
 0x20b   :  { %2912 = vmatpush3.bf16.msra.mxu1 %v3296_v33  ;;  %v2723_v33 = vld [vmem:[%s3690_s8] ss:$0 sm:$0xff] }
 0x20c   :  { %2913 = vmatprep.subr.bf16.mxu1 %v3375_v5 }
 0x20f   :  { %2914 = vmatpush3.bf16.msra.mxu1 %v3297_v34 }
 0x210   :  { %2915 = vmatprep.subr.bf16.mxu1 %v3375_v5 }
 0x213   :  { %2916 = vmatpush3.bf16.msra.mxu1 %v3298_v35 }
 0x214   :  { %2917 = vmatprep.subr.bf16.mxu1 %v3375_v5 }
 0x217   :  { %2918 = vmatpush3.bf16.msra.mxu1 %v3299_v38 }
 0x218   :  { %2919 = vmatprep.subr.bf16.mxu1 %v3375_v5 }
 0x21b   :  { %2920 = vmatpush3.bf16.msra.mxu1 %v3300_v39 }
 0x21c   :  { %2921 = vmatprep.subr.bf16.mxu1 %v3375_v5 }
 0x21f   :  { %2922 = vmatpush3.bf16.msra.mxu1 %v3301_v40 }
 0x220   :  { %2947 = vmatprep.subr.bf16.mxu1 %v3375_v5 }
 0x295   :  { %v2823_v41 = vpop.f32.mrb[4].mxu0 }
 0x296   :  { %v2824_v42 = vpop.f32.mrb[5].mxu0 }
 0x297   :  { %v2825_v43 = vadd.f32 %v2824_v42, %v2823_v41  ;;  %v2826_v44 = vpop.f32.mrb[6].mxu0 }
 0x298   :  { %v2827_v45 = vpop.f32.mrb[7].mxu0 }
 0x299   :  { %v1919_v59 = vadd.f32 %v2825_v43, %v1414_v36 }
 0x2b5   :  { %v1877_v49 = vpop.f32.mrb[12].mxu1 }
 0x2b6   :  { %v2969_v50 = vadd.f32 %v1877_v49, %v1406_v47  ;;  %v1879_v51 = vpop.f32.mrb[13].mxu1 }
 0x2b7   :  { %v2970_v52 = vadd.f32 %v1879_v51, %v1410_v48  ;;  %v1881_v53 = vpop.f32.mrb[14].mxu1 }
 0x2b8   :  { %v1964_v54 = vmax.f32 %v2969_v50, 0.0  ;;  %v1882_v55 = vpop.f32.mrb[15].mxu1 }
 0x2b9   :  { %v1965_v56 = vmax.f32 %v2970_v52, 0.0 }
 0x2ba   :  { %v2016_v58 = vpack.c.bf16 %v1964_v54, %v1964_v54 }
 0x2bb   :  { %v2017_v57 = vpack.c.bf16 %v1965_v56, %v1965_v56 }
 0x2bd   :  { %2201 = vmatprep.mubr.bf16.mxu0 %v2017_v57 }
 0x2be   :  { %2202 = vmatmul.mubr.bf16.vlgmr.msra.gmra.mrb[8].mxu0 %v2016_v58 }
 0x2bf   :  { %2943 = vmatprep.mubr.msk.bf16.mxu0 %vm3376_vm0, %v3375_v5  ;;  %2928 = vmatpush3.bf16.msra.mxu0 %v3302_v2 }
 0x2c0   :  { %2929 = vmatprep.subr.bf16.mxu0 %v3375_v5 }
 0x2c3   :  { %2930 = vmatpush3.bf16.msra.mxu0 %v3303_v19 }
 0x2c4   :  { %2931 = vmatprep.subr.bf16.mxu0 %v3375_v5 }
 0x2c7   :  { %2932 = vmatpush3.bf16.msra.mxu0 %v3304_v20 }
 0x2c8   :  { %2933 = vmatprep.subr.bf16.mxu0 %v3375_v5 }
 0x2cb   :  { %2934 = vmatpush3.bf16.msra.mxu0 %v3305_v3 }
 0x2cc   :  { %2935 = vmatprep.subr.bf16.mxu0 %v3375_v5 }
 0x2cf   :  { %2936 = vmatpush3.bf16.msra.mxu0 %v3306_v4 }
 0x2d0   :  { %2937 = vmatprep.subr.bf16.mxu0 %v3375_v5 }
 0x2d3   :  { %2938 = vmatpush3.bf16.msra.mxu0 %v3307_v6 }
 0x2d4   :  { %2939 = vmatprep.subr.bf16.mxu0 %v3375_v5 }
 0x2d5   :  { %v1958_v37 = vpop.f32.mrb[16].mxu1 }
 0x2d6   :  { %v1959_v60 = vadd.f32 %v1958_v37, %v1919_v59  ;;  %v2905_v61 = vpop.f32.mrb[17].mxu1 }
 0x2d7   :  { %v1961_v62 = vpop.f32.mrb[18].mxu1  ;;  %2940 = vmatpush3.bf16.msra.mxu0 %v3308_v7 }
 0x2d8   :  { %v1966_v63 = vmax.f32 %v1959_v60, 0.0  ;;  %v2906_v0 = vpop.f32.mrb[19].mxu1  ;;  %2941 = vmatprep.subr.bf16.mxu0 %v3375_v5 }
 0x2da   :  { %v2018_v1 = vpack.c.bf16 %v1966_v63, %v1966_v63 }
 0x2db   :  { %2942 = vmatpush3.bf16.msra.mxu0 %v3309_v8 }
 0x2dc   :  { %2924 = vmatmul.mubr.bf16.vlgmr.msra.gmra.mrb[20].mxu1 %v2018_v1 }
 0x2dd   :  { %2963 = vmatprep.mubr.msk.bf16.mxu1 %vm3376_vm0, %v3375_v5  ;;  %2948 = vmatpush3.bf16.msra.mxu1 %v3310_v9 }
 0x2de   :  { %2949 = vmatprep.subr.bf16.mxu1 %v3375_v5 }
 0x2e1   :  { %2950 = vmatpush3.bf16.msra.mxu1 %v3311_v10 }
 0x2e2   :  { %2951 = vmatprep.subr.bf16.mxu1 %v3375_v5 }
 0x2e5   :  { %2952 = vmatpush3.bf16.msra.mxu1 %v3312_v11 }
 0x2e6   :  { %2953 = vmatprep.subr.bf16.mxu1 %v3375_v5 }
 0x2e9   :  { %2954 = vmatpush3.bf16.msra.mxu1 %v3313_v12 }
 0x2ea   :  { %2955 = vmatprep.subr.bf16.mxu1 %v3375_v5 }
 0x2ed   :  { %2956 = vmatpush3.bf16.msra.mxu1 %v3314_v29 }
 0x2ee   :  { %2957 = vmatprep.subr.bf16.mxu1 %v3375_v5 }
 0x2f1   :  { %2958 = vmatpush3.bf16.msra.mxu1 %v3315_v30 }
 0x2f2   :  { %2959 = vmatprep.subr.bf16.mxu1 %v3375_v5 }
 0x2f5   :  { %2960 = vmatpush3.bf16.msra.mxu1 %v3316_v31 }
 0x2f6   :  { %2961 = vmatprep.subr.bf16.mxu1 %v3375_v5  ;;  %v2732_v5 = vld [vmem:[%s3692_s10] ss:$0 sm:$0xff] }
 0x2f9   :  { %2962 = vmatpush3.bf16.msra.mxu1 %v3317_v32 }
 0x391   :  { %v2854_v13 = vpop.f32.mrb[8].mxu0 }
 0x392   :  { %v2855_v14 = vpop.f32.mrb[9].mxu0 }
 0x393   :  { %v2856_v15 = vadd.f32 %v2855_v14, %v2854_v13  ;;  %v2857_v16 = vpop.f32.mrb[10].mxu0 }
 0x394   :  { %v2858_v17 = vpop.f32.mrb[11].mxu0 }
 0x395   :  { %v2204_v21 = vadd.f32 %v2856_v15, %v2698_v18 }
 0x3af   :  { %v2243_v22 = vpop.f32.mrb[20].mxu1 }
 0x3b0   :  { %v2244_v23 = vadd.f32 %v2243_v22, %v2204_v21  ;;  %v2925_v24 = vpop.f32.mrb[21].mxu1 }
 0x3b1   :  { %v2246_v25 = vpop.f32.mrb[22].mxu1 }
 0x3b2   :  { %3318 = vtanh.f32 %v2244_v23  ;;  %v2926_v26 = vpop.f32.mrb[23].mxu1 }
 0x3bc   :  { %v3319_v27 = vpop.eup %3318 }
 0x3bd   :  { %v2267_v28 = vpack.c.bf16 %v3319_v27, %v3319_v27 }
 0x3bf   :  { %2944 = vmatmul.mubr.bf16.vlgmr.msra.gmra.mrb[12].mxu0 %v2267_v28 }
 0x492   :  { %v2356_v34 = vpop.f32.mrb[12].mxu0 }
 0x493   :  { %v2357_v35 = vadd.f32 %v2723_v33, %v2356_v34  ;;  %v2945_v38 = vpop.f32.mrb[13].mxu0 }
 0x494   :  { %v2359_v39 = vpop.f32.mrb[14].mxu0 }
 0x495   :  { %3320 = vtanh.f32 %v2357_v35  ;;  %v2946_v40 = vpop.f32.mrb[15].mxu0 }
 0x49f   :  { %v3321_v41 = vpop.eup %3320 }
 0x4a0   :  { %v2380_v42 = vpack.c.bf16 %v3321_v41, %v3321_v41 }
 0x4a2   :  { %2964 = vmatmul.mubr.bf16.vlgmr.msra.gmra.mrb[24].mxu1 %v2380_v42 }
 0x575   :  { %v2469_v43 = vpop.f32.mrb[24].mxu1 }
 0x576   :  { %v2470_v44 = vadd.f32 %v2732_v5, %v2469_v43  ;;  %v2965_v45 = vpop.f32.mrb[25].mxu1 }
 0x577   :  { %v2472_v46 = vpop.f32.mrb[26].mxu1 }
 0x578   :  { %2475 = vst [vmem:[%s3693_s11] sm:$0xff] %v2470_v44  ;;  %v2966_v47 = vpop.f32.mrb[27].mxu1 }
 0x579   :  { %2480 = vsyncpa [#allocation3], 1 }
 0x57a   :  { %2481 = vsyncpa [#allocation5], 1 }

</bundles_post_ra>
